<compile_context>
chip_gen: v7x
topology: tpu7x:2x2x1
jax: 0.10.0
libtpu: 0.0.40
codegen_flags: <defaults>
</compile_context>

<pallas_src>
import jax
import jax.numpy as jnp
from jax.experimental import pallas as pl
from jax.experimental.pallas import tpu as pltpu


def _add_relu_kernel(a_ref, b_ref, o_ref):
    # Pure VPU hot path: elementwise add + relu on the whole tile.
    o_ref[...] = jnp.maximum(a_ref[...] + b_ref[...], 0.0)


def _choose_lanes(total, sub_mult):
    """Pick a wide lane dimension L (multiple of 128) that divides `total`."""
    cands = (8192, 4096, 2048, 1024, 512, 256, 128)
    # Prefer an L that also leaves the row count sublane-aligned.
    for L in cands:
        if total % L == 0 and (total // L) % sub_mult == 0:
            return L
    for L in cands:
        if total % L == 0:
            return L
    return None


def add_relu(x15, x23, *, target_block_bytes=2 << 20):
    assert x15.shape == x23.shape and x15.dtype == x23.dtype
    orig_shape = x15.shape
    dtype = x15.dtype
    itemsize = jnp.dtype(dtype).itemsize
    # Sublane packing: 8 rows for 32-bit, 16 for bf16, 32 for int8.
    sub_mult = max(8, 32 // itemsize)
    total = x15.size

    a = x15.reshape(-1)
    b = x23.reshape(-1)

    # --- choose the lane-dense slab layout (rows, L), avoiding padding ---
    L = _choose_lanes(total, sub_mult)
    work_total = total
    if L is None:
        # Rare ragged tail (total not a multiple of 128): pad the flat arrays
        # once so the reshape below is legal.
        chunk = 128 * sub_mult
        work_total = -(-total // chunk) * chunk
        pad = work_total - total
        a = jnp.pad(a, (0, pad))
        b = jnp.pad(b, (0, pad))
        L = _choose_lanes(work_total, sub_mult)

    rows = work_total // L
    a = a.reshape(rows, L)
    b = b.reshape(rows, L)

    # --- choose tile_rows: ~target_block_bytes per operand, sublane aligned ---
    max_rows = max(
        sub_mult,
        (target_block_bytes // (L * itemsize)) // sub_mult * sub_mult,
    )
    if rows <= max_rows:
        # Small input: a single full-extent block (full dims need not be
        # 8-aligned, so ragged `rows` is fine here).
        tile_rows = rows
        grid = (1,)
    else:
        # Fixed sublane-aligned tile; Pallas masks the ragged boundary block,
        # so no row padding / extra HBM traffic is needed.
        tile_rows = max_rows
        grid = (pl.cdiv(rows, tile_rows),)

    spec = pl.BlockSpec((tile_rows, L), lambda i: (i, 0))

    out = pl.pallas_call(
        _add_relu_kernel,
        out_shape=jax.ShapeDtypeStruct((rows, L), dtype),
        grid=grid,
        in_specs=[spec, spec],
        out_specs=spec,
        compiler_params=pltpu.CompilerParams(
            dimension_semantics=("parallel",),
        ),
    )(a, b)

    if work_total != total:
        return out.reshape(-1)[:total].reshape(orig_shape)
    return out.reshape(orig_shape)


if __name__ == "__main__":
    key = jax.random.PRNGKey(0)
    k1, k2 = jax.random.split(key)

    # Shapes implied by the module spec: (1, 72, 56, 56), float32.
    x15 = jax.random.normal(k1, (1, 72, 56, 56), dtype=jnp.float32)
    x23 = jax.random.normal(k2, (1, 72, 56, 56), dtype=jnp.float32)

    out = add_relu(x15, x23)
    jax.block_until_ready(out)

    ref = jnp.maximum(x15 + x23, 0.0)
    assert out.shape == ref.shape and out.dtype == ref.dtype
    assert jnp.allclose(out, ref, atol=1e-6), "mismatch vs reference"

    # Also exercise the multi-block (grid > 1, ragged boundary) tiling path.
    y1 = jax.random.normal(k1, (1, 72, 112, 112), dtype=jnp.float32)
    y2 = jax.random.normal(k2, (1, 72, 112, 112), dtype=jnp.float32)
    out2 = add_relu(y1, y2)
    jax.block_until_ready(out2)
    assert jnp.allclose(out2, jnp.maximum(y1 + y2, 0.0), atol=1e-6), "mismatch (multi-block)"

    print("KERNEL_OK")
</pallas_src>

<mosaic_0001>
module attributes {stable_mosaic.version = 11 : i64} {
  func.func @_add_relu_kernel(%arg0: i32, %arg1: memref<441x512xf32, #tpu.memory_space<vmem>>, %arg2: memref<441x512xf32, #tpu.memory_space<vmem>>, %arg3: memref<441x512xf32, #tpu.memory_space<vmem>>) attributes {dimension_semantics = [#tpu.dimension_semantics<parallel>], iteration_bounds = array<i64: 1>, scalar_prefetch = 0 : i64, scratch_operands = 0 : i64, tpu.core_type = #tpu.core_type<tc>, window_params = [{transform_indices = @transform_0, window_bounds = array<i64: 441, 512>}, {transform_indices = @transform_1, window_bounds = array<i64: 441, 512>}, {transform_indices = @transform_2, window_bounds = array<i64: 441, 512>}]} {
    %c0 = arith.constant 0 : index
    %c0_0 = arith.constant 0 : index
    %0 = vector.load %arg1[%c0, %c0_0] : memref<441x512xf32, #tpu.memory_space<vmem>>, vector<441x512xf32>
    %c0_1 = arith.constant 0 : index
    %c0_2 = arith.constant 0 : index
    %1 = vector.load %arg2[%c0_1, %c0_2] : memref<441x512xf32, #tpu.memory_space<vmem>>, vector<441x512xf32>
    %2 = arith.addf %0, %1 : vector<441x512xf32>
    %cst = arith.constant 0.000000e+00 : f32
    %3 = vector.broadcast %cst : f32 to vector<441x512xf32>
    %4 = arith.maximumf %2, %3 : vector<441x512xf32>
    %c0_3 = arith.constant 0 : index
    %c0_4 = arith.constant 0 : index
    %5 = vector.load %arg3[%c0_3, %c0_4] : memref<441x512xf32, #tpu.memory_space<vmem>>, vector<441x512xf32>
    tpu.vector_store %arg3[%c0_3, %c0_4], %4 {strides = array<i32>} : memref<441x512xf32, #tpu.memory_space<vmem>>, vector<441x512xf32>,
    return
  }
  func.func @transform_0(%arg0: i32) -> (i32, i32) {
    %c0_i32 = arith.constant 0 : i32
    %c0_i32_0 = arith.constant 0 : i32
    return %arg0, %c0_i32 : i32, i32
  }
  func.func @transform_1(%arg0: i32) -> (i32, i32) {
    %c0_i32 = arith.constant 0 : i32
    %c0_i32_0 = arith.constant 0 : i32
    return %arg0, %c0_i32 : i32, i32
  }
  func.func @transform_2(%arg0: i32) -> (i32, i32) {
    %c0_i32 = arith.constant 0 : i32
    %c0_i32_0 = arith.constant 0 : i32
    return %arg0, %c0_i32 : i32, i32
  }
}

</mosaic_0001>

<bundles_post_ra>
// kernel: tpu_custom_call.1
= control target key start
LH: loop header
LB: loop body
LE: loop exit
PB: predicated region body
PF: predicated region fallthrough
CT: control target
= control target key end

     0   :  { %7 = vsyncpa [#allocation3], 0  ;;  %s1320_s0 = inlined_call_operand.hbm [shape: f32[441,512], index: 0, kind: input, shape index: {}]   ;;  %s1321_s1 = inlined_call_operand.hbm [shape: f32[441,512], index: 1, kind: input, shape index: {}]   ;;  %s1322_s2 = inlined_call_operand.hbm [shape: f32[441,512], index: 2, kind: output, shape index: {}]  }
   0x1   :  { %8 = vsyncpa [#allocation6], 0 }
   0x2   :  { %9 = vsyncpa [#allocation4], 0  ;;  %s1255_s9 = smov [#allocation2]   ;;  %s1183_s13 = scalar_lea.hbm %s1320_s0, 28672 }
   0x3   :  { %s15_s10 = sshll.u32 %s1255_s9, 4  ;;  %p1184_p0 = scmp.ne.s32.totalorder %s1320_s0, %s1183_s13  ;;  %s16_s10 = int_to_ptr.vmem [resolvable:$true] %s15_s10 }
   0x4   :  { %p1187_p1 = scmp.lt.u32.totalorder %s1183_s13, %s1320_s0 }
   0x6   :  { %p1189_p2 = pnand %p1187_p1, %p1184_p0 }
   0x8   :  { %1192 = shalt.err (!%p1189_p2)
}
   0x9   :  { %s1193_s18 = scalar_lea.vmem %s16_s10, 28672  ;;  %p1198_p4 = scmp.lt.s32.totalorder %s16_s10, %s16_s10 }
   0xa   :  { %p1194_p3 = scmp.ne.s32.totalorder %s16_s10, %s1193_s18  ;;  %p1199_p5 = scmp.lt.s32.totalorder %s1193_s18, %s1193_s18 }
   0xc   :  { %p1200_p6 = por %p1199_p5, %p1198_p4 }
   0xe   :  { %p1201_p7 = pnand %p1200_p6, %p1194_p3 }
  0x10   :  { %1204 = shalt.err (!%p1201_p7)
}
  0x11   :  { %s1256_s19 = smov 512   ;;  %s1257_s20 = smov 32  }
  0x12   :  { %21 = dma.hbm_to_vmem [thread:$0]  %s1320_s0, 28672, %s16_s10, [#allocation3], %s1256_s19, %s1256_s19, %s1257_s20  }
  0x13   :  { %s1258_s23 = smov [#allocation5]   ;;  %s1205_s27 = scalar_lea.hbm %s1321_s1, 28672 }
  0x14   :  { %s27_s24 = sshll.u32 %s1258_s23, 4  ;;  %p1206_p8 = scmp.ne.s32.totalorder %s1321_s1, %s1205_s27  ;;  %s28_s24 = int_to_ptr.vmem [resolvable:$true] %s27_s24 }
  0x15   :  { %p1209_p9 = scmp.lt.u32.totalorder %s1205_s27, %s1321_s1 }
  0x17   :  { %p1211_p10 = pnand %p1209_p9, %p1206_p8 }
  0x19   :  { %1214 = shalt.err (!%p1211_p10)
}
  0x1a   :  { %s1215_s4 = scalar_lea.vmem %s28_s24, 28672  ;;  %p1220_p12 = scmp.lt.s32.totalorder %s28_s24, %s28_s24 }
  0x1b   :  { %p1216_p11 = scmp.ne.s32.totalorder %s28_s24, %s1215_s4  ;;  %p1221_p13 = scmp.lt.s32.totalorder %s1215_s4, %s1215_s4 }
  0x1d   :  { %p1222_p0 = por %p1221_p13, %p1220_p12 }
  0x1f   :  { %p1223_p1 = pnand %p1222_p0, %p1216_p11 }
  0x21   :  { %1226 = shalt.err (!%p1223_p1)
}
  0x22   :  { %33 = dma.hbm_to_vmem [thread:$0]  %s1321_s1, 28672, %s28_s24, [#allocation6], %s1256_s19, %s1256_s19, %s1257_s20  }
  0x23   :  { %1249 = dma.done.wait [#allocation3], 28672  }
  0x24   :  { %1250 = vsyncadd [#allocation3], 4294938624 }
  0x25   :  { %1251 = dma.done.wait [#allocation6], 28672  }
  0x26   :  { %1252 = vsyncadd [#allocation6], 4294938624  ;;  %v40_v0 = vld [vmem:[#allocation2] sm:$0xff]  ;;  %v41_v2 = vld [vmem:[#allocation2 + $0x8] sm:$0xff]  ;;  %s1259_s1 = smov [#allocation7]  }
  0x27   :  { %v264_v1 = vld [vmem:[#allocation5] sm:$0xff]  ;;  %v265_v4 = vld [vmem:[#allocation5 + $0x8] sm:$0xff]  ;;  %v42_v5 = vld [vmem:[#allocation2 + $0x10] sm:$0xff]  ;;  %s1165_s6 = sshll.u32 %s1259_s1, 4  ;;  %s1166_s6 = int_to_ptr.vmem [resolvable:$true] %s1165_s6 }
  0x28   :  { %v488_v3 = vadd.f32 %v264_v1, %v40_v0  ;;  %v266_v6 = vld [vmem:[#allocation5 + $0x10] sm:$0xff]  ;;  %v489_v7 = vadd.f32 %v265_v4, %v41_v2  ;;  %v43_v9 = vld [vmem:[#allocation2 + $0x18] sm:$0xff]  ;;  %v44_v11 = vld [vmem:[#allocation2 + $0x20] sm:$0xff]  ;;  %s1227_s7 = scalar_lea.vmem %s1166_s6, 28672  ;;  %p1232_p3 = scmp.lt.s32.totalorder %s1166_s6, %s1166_s6 }
  0x29   :  { %v490_v8 = vadd.f32 %v266_v6, %v42_v5  ;;  %v267_v10 = vld [vmem:[#allocation5 + $0x18] sm:$0xff]  ;;  %v268_v14 = vld [vmem:[#allocation5 + $0x20] sm:$0xff]  ;;  %v45_v15 = vld [vmem:[#allocation2 + $0x28] sm:$0xff]  ;;  %p1228_p2 = scmp.ne.s32.totalorder %s1166_s6, %s1227_s7  ;;  %p1233_p4 = scmp.lt.s32.totalorder %s1227_s7, %s1227_s7 }
  0x2a   :  { %v712_v12 = vmax.f32 %v488_v3, 0.0  ;;  %v491_v13 = vadd.f32 %v267_v10, %v43_v9  ;;  %v269_v16 = vld [vmem:[#allocation5 + $0x28] sm:$0xff]  ;;  %v713_v17 = vmax.f32 %v489_v7, 0.0  ;;  %v492_v19 = vadd.f32 %v268_v14, %v44_v11  ;;  %v46_v21 = vld [vmem:[#allocation2 + $0x30] sm:$0xff]  ;;  %v47_v23 = vld [vmem:[#allocation2 + $0x38] sm:$0xff] }
  0x2b   :  { %v714_v18 = vmax.f32 %v490_v8, 0.0  ;;  %v493_v20 = vadd.f32 %v269_v16, %v45_v15  ;;  %v270_v22 = vld [vmem:[#allocation5 + $0x30] sm:$0xff]  ;;  %v271_v26 = vld [vmem:[#allocation5 + $0x38] sm:$0xff]  ;;  %v48_v27 = vld [vmem:[#allocation2 + $0x40] sm:$0xff]  ;;  %p1234_p5 = por %p1233_p4, %p1232_p3 }
  0x2c   :  { %936 = vst [vmem:[#allocation7] sm:$0xff] %v712_v12  ;;  %v715_v24 = vmax.f32 %v491_v13, 0.0  ;;  %v494_v25 = vadd.f32 %v270_v22, %v46_v21  ;;  %v272_v28 = vld [vmem:[#allocation5 + $0x40] sm:$0xff]  ;;  %937 = vst [vmem:[#allocation7 + $0x8] sm:$0xff] %v713_v17  ;;  %v716_v29 = vmax.f32 %v492_v19, 0.0  ;;  %v495_v31 = vadd.f32 %v271_v26, %v47_v23  ;;  %v49_v33 = vld [vmem:[#allocation2 + $0x48] sm:$0xff] }
  0x2d   :  { %938 = vst [vmem:[#allocation7 + $0x10] sm:$0xff] %v714_v18  ;;  %v717_v30 = vmax.f32 %v493_v20, 0.0  ;;  %v496_v32 = vadd.f32 %v272_v28, %v48_v27  ;;  %v273_v34 = vld [vmem:[#allocation5 + $0x48] sm:$0xff]  ;;  %v50_v35 = vld [vmem:[#allocation2 + $0x50] sm:$0xff]  ;;  %v51_v39 = vld [vmem:[#allocation2 + $0x58] sm:$0xff]  ;;  %p1235_p6 = pnand %p1234_p5, %p1228_p2 }
  0x2e   :  { %939 = vst [vmem:[#allocation7 + $0x18] sm:$0xff] %v715_v24  ;;  %v718_v36 = vmax.f32 %v494_v25, 0.0  ;;  %v497_v37 = vadd.f32 %v273_v34, %v49_v33  ;;  %v274_v38 = vld [vmem:[#allocation5 + $0x50] sm:$0xff]  ;;  %v275_v40 = vld [vmem:[#allocation5 + $0x58] sm:$0xff]  ;;  %940 = vst [vmem:[#allocation7 + $0x20] sm:$0xff] %v716_v29  ;;  %v719_v41 = vmax.f32 %v495_v31, 0.0 }
  0x2f   :  { %941 = vst [vmem:[#allocation7 + $0x28] sm:$0xff] %v717_v30  ;;  %v720_v42 = vmax.f32 %v496_v32, 0.0  ;;  %v498_v43 = vadd.f32 %v274_v38, %v50_v35  ;;  %v499_v44 = vadd.f32 %v275_v40, %v51_v39  ;;  %v52_v45 = vld [vmem:[#allocation2 + $0x60] sm:$0xff]  ;;  %v53_v47 = vld [vmem:[#allocation2 + $0x68] sm:$0xff]  ;;  %v54_v51 = vld [vmem:[#allocation2 + $0x70] sm:$0xff] }
  0x30   :  { %v276_v46 = vld [vmem:[#allocation5 + $0x60] sm:$0xff]  ;;  %942 = vst [vmem:[#allocation7 + $0x30] sm:$0xff] %v718_v36  ;;  %v721_v48 = vmax.f32 %v497_v37, 0.0  ;;  %v277_v50 = vld [vmem:[#allocation5 + $0x68] sm:$0xff]  ;;  %v278_v52 = vld [vmem:[#allocation5 + $0x70] sm:$0xff] }
  0x31   :  { %v500_v49 = vadd.f32 %v276_v46, %v52_v45  ;;  %943 = vst [vmem:[#allocation7 + $0x38] sm:$0xff] %v719_v41  ;;  %944 = vst [vmem:[#allocation7 + $0x40] sm:$0xff] %v720_v42  ;;  %v722_v53 = vmax.f32 %v498_v43, 0.0  ;;  %v723_v54 = vmax.f32 %v499_v44, 0.0  ;;  %v501_v55 = vadd.f32 %v277_v50, %v53_v47  ;;  %v55_v57 = vld [vmem:[#allocation2 + $0x78] sm:$0xff]  ;;  %v56_v59 = vld [vmem:[#allocation2 + $0x80] sm:$0xff] }
  0x32   :  { %v502_v56 = vadd.f32 %v278_v52, %v54_v51  ;;  %v279_v58 = vld [vmem:[#allocation5 + $0x78] sm:$0xff]  ;;  %945 = vst [vmem:[#allocation7 + $0x48] sm:$0xff] %v721_v48  ;;  %v280_v62 = vld [vmem:[#allocation5 + $0x80] sm:$0xff]  ;;  %v57_v63 = vld [vmem:[#allocation2 + $0x88] sm:$0xff] }
  0x33   :  { %v724_v60 = vmax.f32 %v500_v49, 0.0  ;;  %v503_v61 = vadd.f32 %v279_v58, %v55_v57  ;;  %v281_v0 = vld [vmem:[#allocation5 + $0x88] sm:$0xff]  ;;  %946 = vst [vmem:[#allocation7 + $0x50] sm:$0xff] %v722_v53  ;;  %947 = vst [vmem:[#allocation7 + $0x58] sm:$0xff] %v723_v54  ;;  %v725_v1 = vmax.f32 %v501_v55, 0.0  ;;  %v504_v3 = vadd.f32 %v280_v62, %v56_v59  ;;  %v58_v5 = vld [vmem:[#allocation2 + $0x90] sm:$0xff] }
  0x34   :  { %v726_v2 = vmax.f32 %v502_v56, 0.0  ;;  %v505_v4 = vadd.f32 %v281_v0, %v57_v63  ;;  %v282_v6 = vld [vmem:[#allocation5 + $0x90] sm:$0xff]  ;;  %v59_v7 = vld [vmem:[#allocation2 + $0x98] sm:$0xff]  ;;  %v60_v11 = vld [vmem:[#allocation2 + $0xa0] sm:$0xff] }
  0x35   :  { %948 = vst [vmem:[#allocation7 + $0x60] sm:$0xff] %v724_v60  ;;  %v727_v8 = vmax.f32 %v503_v61, 0.0  ;;  %v506_v9 = vadd.f32 %v282_v6, %v58_v5  ;;  %v283_v10 = vld [vmem:[#allocation5 + $0x98] sm:$0xff]  ;;  %v284_v12 = vld [vmem:[#allocation5 + $0xa0] sm:$0xff]  ;;  %949 = vst [vmem:[#allocation7 + $0x68] sm:$0xff] %v725_v1  ;;  %v728_v13 = vmax.f32 %v504_v3, 0.0 }
  0x36   :  { %950 = vst [vmem:[#allocation7 + $0x70] sm:$0xff] %v726_v2  ;;  %v729_v14 = vmax.f32 %v505_v4, 0.0  ;;  %v507_v15 = vadd.f32 %v283_v10, %v59_v7  ;;  %v508_v16 = vadd.f32 %v284_v12, %v60_v11  ;;  %v61_v17 = vld [vmem:[#allocation2 + $0xa8] sm:$0xff]  ;;  %v62_v19 = vld [vmem:[#allocation2 + $0xb0] sm:$0xff]  ;;  %v63_v23 = vld [vmem:[#allocation2 + $0xb8] sm:$0xff] }
  0x37   :  { %v285_v18 = vld [vmem:[#allocation5 + $0xa8] sm:$0xff]  ;;  %951 = vst [vmem:[#allocation7 + $0x78] sm:$0xff] %v727_v8  ;;  %v730_v20 = vmax.f32 %v506_v9, 0.0  ;;  %v286_v22 = vld [vmem:[#allocation5 + $0xb0] sm:$0xff]  ;;  %v287_v24 = vld [vmem:[#allocation5 + $0xb8] sm:$0xff] }
  0x38   :  { %v509_v21 = vadd.f32 %v285_v18, %v61_v17  ;;  %952 = vst [vmem:[#allocation7 + $0x80] sm:$0xff] %v728_v13  ;;  %953 = vst [vmem:[#allocation7 + $0x88] sm:$0xff] %v729_v14  ;;  %v731_v25 = vmax.f32 %v507_v15, 0.0  ;;  %v732_v26 = vmax.f32 %v508_v16, 0.0  ;;  %v510_v27 = vadd.f32 %v286_v22, %v62_v19  ;;  %v64_v29 = vld [vmem:[#allocation2 + $0xc0] sm:$0xff]  ;;  %v65_v31 = vld [vmem:[#allocation2 + $0xc8] sm:$0xff] }
  0x39   :  { %v511_v28 = vadd.f32 %v287_v24, %v63_v23  ;;  %v288_v30 = vld [vmem:[#allocation5 + $0xc0] sm:$0xff]  ;;  %954 = vst [vmem:[#allocation7 + $0x90] sm:$0xff] %v730_v20  ;;  %v289_v34 = vld [vmem:[#allocation5 + $0xc8] sm:$0xff]  ;;  %v66_v35 = vld [vmem:[#allocation2 + $0xd0] sm:$0xff] }
  0x3a   :  { %v733_v32 = vmax.f32 %v509_v21, 0.0  ;;  %v512_v33 = vadd.f32 %v288_v30, %v64_v29  ;;  %v290_v36 = vld [vmem:[#allocation5 + $0xd0] sm:$0xff]  ;;  %955 = vst [vmem:[#allocation7 + $0x98] sm:$0xff] %v731_v25  ;;  %956 = vst [vmem:[#allocation7 + $0xa0] sm:$0xff] %v732_v26  ;;  %v734_v37 = vmax.f32 %v510_v27, 0.0  ;;  %v513_v39 = vadd.f32 %v289_v34, %v65_v31  ;;  %v67_v41 = vld [vmem:[#allocation2 + $0xd8] sm:$0xff] }
  0x3b   :  { %v735_v38 = vmax.f32 %v511_v28, 0.0  ;;  %v514_v40 = vadd.f32 %v290_v36, %v66_v35  ;;  %v291_v42 = vld [vmem:[#allocation5 + $0xd8] sm:$0xff]  ;;  %v68_v43 = vld [vmem:[#allocation2 + $0xe0] sm:$0xff]  ;;  %v69_v47 = vld [vmem:[#allocation2 + $0xe8] sm:$0xff] }
  0x3c   :  { %957 = vst [vmem:[#allocation7 + $0xa8] sm:$0xff] %v733_v32  ;;  %v736_v44 = vmax.f32 %v512_v33, 0.0  ;;  %v515_v45 = vadd.f32 %v291_v42, %v67_v41  ;;  %v292_v46 = vld [vmem:[#allocation5 + $0xe0] sm:$0xff]  ;;  %v293_v48 = vld [vmem:[#allocation5 + $0xe8] sm:$0xff]  ;;  %958 = vst [vmem:[#allocation7 + $0xb0] sm:$0xff] %v734_v37  ;;  %v737_v49 = vmax.f32 %v513_v39, 0.0 }
  0x3d   :  { %959 = vst [vmem:[#allocation7 + $0xb8] sm:$0xff] %v735_v38  ;;  %v738_v50 = vmax.f32 %v514_v40, 0.0  ;;  %v516_v51 = vadd.f32 %v292_v46, %v68_v43  ;;  %v517_v52 = vadd.f32 %v293_v48, %v69_v47  ;;  %v70_v53 = vld [vmem:[#allocation2 + $0xf0] sm:$0xff]  ;;  %v71_v55 = vld [vmem:[#allocation2 + $0xf8] sm:$0xff]  ;;  %v72_v59 = vld [vmem:[#allocation2 + $0x100] sm:$0xff] }
  0x3e   :  { %v294_v54 = vld [vmem:[#allocation5 + $0xf0] sm:$0xff]  ;;  %960 = vst [vmem:[#allocation7 + $0xc0] sm:$0xff] %v736_v44  ;;  %v739_v56 = vmax.f32 %v515_v45, 0.0  ;;  %v295_v58 = vld [vmem:[#allocation5 + $0xf8] sm:$0xff]  ;;  %v296_v60 = vld [vmem:[#allocation5 + $0x100] sm:$0xff] }
  0x3f   :  { %v518_v57 = vadd.f32 %v294_v54, %v70_v53  ;;  %961 = vst [vmem:[#allocation7 + $0xc8] sm:$0xff] %v737_v49  ;;  %962 = vst [vmem:[#allocation7 + $0xd0] sm:$0xff] %v738_v50  ;;  %v740_v61 = vmax.f32 %v516_v51, 0.0  ;;  %v741_v62 = vmax.f32 %v517_v52, 0.0  ;;  %v519_v63 = vadd.f32 %v295_v58, %v71_v55  ;;  %v73_v1 = vld [vmem:[#allocation2 + $0x108] sm:$0xff]  ;;  %v74_v3 = vld [vmem:[#allocation2 + $0x110] sm:$0xff] }
  0x40   :  { %v520_v0 = vadd.f32 %v296_v60, %v72_v59  ;;  %v297_v2 = vld [vmem:[#allocation5 + $0x108] sm:$0xff]  ;;  %963 = vst [vmem:[#allocation7 + $0xd8] sm:$0xff] %v739_v56  ;;  %v298_v6 = vld [vmem:[#allocation5 + $0x110] sm:$0xff]  ;;  %v75_v7 = vld [vmem:[#allocation2 + $0x118] sm:$0xff] }
  0x41   :  { %v742_v4 = vmax.f32 %v518_v57, 0.0  ;;  %v521_v5 = vadd.f32 %v297_v2, %v73_v1  ;;  %v299_v8 = vld [vmem:[#allocation5 + $0x118] sm:$0xff]  ;;  %964 = vst [vmem:[#allocation7 + $0xe0] sm:$0xff] %v740_v61  ;;  %965 = vst [vmem:[#allocation7 + $0xe8] sm:$0xff] %v741_v62  ;;  %v743_v9 = vmax.f32 %v519_v63, 0.0  ;;  %v522_v11 = vadd.f32 %v298_v6, %v74_v3  ;;  %v76_v13 = vld [vmem:[#allocation2 + $0x120] sm:$0xff] }
  0x42   :  { %v744_v10 = vmax.f32 %v520_v0, 0.0  ;;  %v523_v12 = vadd.f32 %v299_v8, %v75_v7  ;;  %v300_v14 = vld [vmem:[#allocation5 + $0x120] sm:$0xff]  ;;  %v77_v15 = vld [vmem:[#allocation2 + $0x128] sm:$0xff]  ;;  %v78_v19 = vld [vmem:[#allocation2 + $0x130] sm:$0xff] }
  0x43   :  { %966 = vst [vmem:[#allocation7 + $0xf0] sm:$0xff] %v742_v4  ;;  %v745_v16 = vmax.f32 %v521_v5, 0.0  ;;  %v524_v17 = vadd.f32 %v300_v14, %v76_v13  ;;  %v301_v18 = vld [vmem:[#allocation5 + $0x128] sm:$0xff]  ;;  %v302_v20 = vld [vmem:[#allocation5 + $0x130] sm:$0xff]  ;;  %967 = vst [vmem:[#allocation7 + $0xf8] sm:$0xff] %v743_v9  ;;  %v746_v21 = vmax.f32 %v522_v11, 0.0 }
  0x44   :  { %968 = vst [vmem:[#allocation7 + $0x100] sm:$0xff] %v744_v10  ;;  %v747_v22 = vmax.f32 %v523_v12, 0.0  ;;  %v525_v23 = vadd.f32 %v301_v18, %v77_v15  ;;  %v526_v24 = vadd.f32 %v302_v20, %v78_v19  ;;  %v79_v25 = vld [vmem:[#allocation2 + $0x138] sm:$0xff]  ;;  %v80_v27 = vld [vmem:[#allocation2 + $0x140] sm:$0xff]  ;;  %v81_v31 = vld [vmem:[#allocation2 + $0x148] sm:$0xff] }
  0x45   :  { %v303_v26 = vld [vmem:[#allocation5 + $0x138] sm:$0xff]  ;;  %969 = vst [vmem:[#allocation7 + $0x108] sm:$0xff] %v745_v16  ;;  %v748_v28 = vmax.f32 %v524_v17, 0.0  ;;  %v304_v30 = vld [vmem:[#allocation5 + $0x140] sm:$0xff]  ;;  %v305_v32 = vld [vmem:[#allocation5 + $0x148] sm:$0xff] }
  0x46   :  { %v527_v29 = vadd.f32 %v303_v26, %v79_v25  ;;  %970 = vst [vmem:[#allocation7 + $0x110] sm:$0xff] %v746_v21  ;;  %971 = vst [vmem:[#allocation7 + $0x118] sm:$0xff] %v747_v22  ;;  %v749_v33 = vmax.f32 %v525_v23, 0.0  ;;  %v750_v34 = vmax.f32 %v526_v24, 0.0  ;;  %v528_v35 = vadd.f32 %v304_v30, %v80_v27  ;;  %v82_v37 = vld [vmem:[#allocation2 + $0x150] sm:$0xff]  ;;  %v83_v39 = vld [vmem:[#allocation2 + $0x158] sm:$0xff] }
  0x47   :  { %v529_v36 = vadd.f32 %v305_v32, %v81_v31  ;;  %v306_v38 = vld [vmem:[#allocation5 + $0x150] sm:$0xff]  ;;  %972 = vst [vmem:[#allocation7 + $0x120] sm:$0xff] %v748_v28  ;;  %v307_v42 = vld [vmem:[#allocation5 + $0x158] sm:$0xff]  ;;  %v84_v43 = vld [vmem:[#allocation2 + $0x160] sm:$0xff] }
  0x48   :  { %v751_v40 = vmax.f32 %v527_v29, 0.0  ;;  %v530_v41 = vadd.f32 %v306_v38, %v82_v37  ;;  %v308_v44 = vld [vmem:[#allocation5 + $0x160] sm:$0xff]  ;;  %973 = vst [vmem:[#allocation7 + $0x128] sm:$0xff] %v749_v33  ;;  %974 = vst [vmem:[#allocation7 + $0x130] sm:$0xff] %v750_v34  ;;  %v752_v45 = vmax.f32 %v528_v35, 0.0  ;;  %v531_v47 = vadd.f32 %v307_v42, %v83_v39  ;;  %v85_v49 = vld [vmem:[#allocation2 + $0x168] sm:$0xff] }
  0x49   :  { %v753_v46 = vmax.f32 %v529_v36, 0.0  ;;  %v532_v48 = vadd.f32 %v308_v44, %v84_v43  ;;  %v309_v50 = vld [vmem:[#allocation5 + $0x168] sm:$0xff]  ;;  %v86_v51 = vld [vmem:[#allocation2 + $0x170] sm:$0xff]  ;;  %v87_v55 = vld [vmem:[#allocation2 + $0x178] sm:$0xff] }
  0x4a   :  { %975 = vst [vmem:[#allocation7 + $0x138] sm:$0xff] %v751_v40  ;;  %v754_v52 = vmax.f32 %v530_v41, 0.0  ;;  %v533_v53 = vadd.f32 %v309_v50, %v85_v49  ;;  %v310_v54 = vld [vmem:[#allocation5 + $0x170] sm:$0xff]  ;;  %v311_v56 = vld [vmem:[#allocation5 + $0x178] sm:$0xff]  ;;  %976 = vst [vmem:[#allocation7 + $0x140] sm:$0xff] %v752_v45  ;;  %v755_v57 = vmax.f32 %v531_v47, 0.0 }
  0x4b   :  { %977 = vst [vmem:[#allocation7 + $0x148] sm:$0xff] %v753_v46  ;;  %v756_v58 = vmax.f32 %v532_v48, 0.0  ;;  %v534_v59 = vadd.f32 %v310_v54, %v86_v51  ;;  %v535_v60 = vadd.f32 %v311_v56, %v87_v55  ;;  %v88_v61 = vld [vmem:[#allocation2 + $0x180] sm:$0xff]  ;;  %v89_v63 = vld [vmem:[#allocation2 + $0x188] sm:$0xff]  ;;  %v90_v3 = vld [vmem:[#allocation2 + $0x190] sm:$0xff] }
  0x4c   :  { %v312_v62 = vld [vmem:[#allocation5 + $0x180] sm:$0xff]  ;;  %978 = vst [vmem:[#allocation7 + $0x150] sm:$0xff] %v754_v52  ;;  %v757_v0 = vmax.f32 %v533_v53, 0.0  ;;  %v313_v2 = vld [vmem:[#allocation5 + $0x188] sm:$0xff]  ;;  %v314_v4 = vld [vmem:[#allocation5 + $0x190] sm:$0xff] }
  0x4d   :  { %v536_v1 = vadd.f32 %v312_v62, %v88_v61  ;;  %979 = vst [vmem:[#allocation7 + $0x158] sm:$0xff] %v755_v57  ;;  %980 = vst [vmem:[#allocation7 + $0x160] sm:$0xff] %v756_v58  ;;  %v758_v5 = vmax.f32 %v534_v59, 0.0  ;;  %v759_v6 = vmax.f32 %v535_v60, 0.0  ;;  %v537_v7 = vadd.f32 %v313_v2, %v89_v63  ;;  %v91_v9 = vld [vmem:[#allocation2 + $0x198] sm:$0xff]  ;;  %v92_v11 = vld [vmem:[#allocation2 + $0x1a0] sm:$0xff] }
  0x4e   :  { %v538_v8 = vadd.f32 %v314_v4, %v90_v3  ;;  %v315_v10 = vld [vmem:[#allocation5 + $0x198] sm:$0xff]  ;;  %981 = vst [vmem:[#allocation7 + $0x168] sm:$0xff] %v757_v0  ;;  %v316_v14 = vld [vmem:[#allocation5 + $0x1a0] sm:$0xff]  ;;  %v93_v15 = vld [vmem:[#allocation2 + $0x1a8] sm:$0xff] }
  0x4f   :  { %v760_v12 = vmax.f32 %v536_v1, 0.0  ;;  %v539_v13 = vadd.f32 %v315_v10, %v91_v9  ;;  %v317_v16 = vld [vmem:[#allocation5 + $0x1a8] sm:$0xff]  ;;  %982 = vst [vmem:[#allocation7 + $0x170] sm:$0xff] %v758_v5  ;;  %983 = vst [vmem:[#allocation7 + $0x178] sm:$0xff] %v759_v6  ;;  %v761_v17 = vmax.f32 %v537_v7, 0.0  ;;  %v540_v19 = vadd.f32 %v316_v14, %v92_v11  ;;  %v94_v21 = vld [vmem:[#allocation2 + $0x1b0] sm:$0xff] }
  0x50   :  { %v762_v18 = vmax.f32 %v538_v8, 0.0  ;;  %v541_v20 = vadd.f32 %v317_v16, %v93_v15  ;;  %v318_v22 = vld [vmem:[#allocation5 + $0x1b0] sm:$0xff]  ;;  %v95_v23 = vld [vmem:[#allocation2 + $0x1b8] sm:$0xff]  ;;  %v96_v27 = vld [vmem:[#allocation2 + $0x1c0] sm:$0xff] }
  0x51   :  { %984 = vst [vmem:[#allocation7 + $0x180] sm:$0xff] %v760_v12  ;;  %v763_v24 = vmax.f32 %v539_v13, 0.0  ;;  %v542_v25 = vadd.f32 %v318_v22, %v94_v21  ;;  %v319_v26 = vld [vmem:[#allocation5 + $0x1b8] sm:$0xff]  ;;  %v320_v28 = vld [vmem:[#allocation5 + $0x1c0] sm:$0xff]  ;;  %985 = vst [vmem:[#allocation7 + $0x188] sm:$0xff] %v761_v17  ;;  %v764_v29 = vmax.f32 %v540_v19, 0.0 }
  0x52   :  { %986 = vst [vmem:[#allocation7 + $0x190] sm:$0xff] %v762_v18  ;;  %v765_v30 = vmax.f32 %v541_v20, 0.0  ;;  %v543_v31 = vadd.f32 %v319_v26, %v95_v23  ;;  %v544_v32 = vadd.f32 %v320_v28, %v96_v27  ;;  %v97_v33 = vld [vmem:[#allocation2 + $0x1c8] sm:$0xff]  ;;  %v98_v35 = vld [vmem:[#allocation2 + $0x1d0] sm:$0xff]  ;;  %v99_v39 = vld [vmem:[#allocation2 + $0x1d8] sm:$0xff] }
  0x53   :  { %v321_v34 = vld [vmem:[#allocation5 + $0x1c8] sm:$0xff]  ;;  %987 = vst [vmem:[#allocation7 + $0x198] sm:$0xff] %v763_v24  ;;  %v766_v36 = vmax.f32 %v542_v25, 0.0  ;;  %v322_v38 = vld [vmem:[#allocation5 + $0x1d0] sm:$0xff]  ;;  %v323_v40 = vld [vmem:[#allocation5 + $0x1d8] sm:$0xff] }
  0x54   :  { %v545_v37 = vadd.f32 %v321_v34, %v97_v33  ;;  %988 = vst [vmem:[#allocation7 + $0x1a0] sm:$0xff] %v764_v29  ;;  %989 = vst [vmem:[#allocation7 + $0x1a8] sm:$0xff] %v765_v30  ;;  %v767_v41 = vmax.f32 %v543_v31, 0.0  ;;  %v768_v42 = vmax.f32 %v544_v32, 0.0  ;;  %v546_v43 = vadd.f32 %v322_v38, %v98_v35  ;;  %v100_v45 = vld [vmem:[#allocation2 + $0x1e0] sm:$0xff]  ;;  %v101_v47 = vld [vmem:[#allocation2 + $0x1e8] sm:$0xff] }
  0x55   :  { %v547_v44 = vadd.f32 %v323_v40, %v99_v39  ;;  %v324_v46 = vld [vmem:[#allocation5 + $0x1e0] sm:$0xff]  ;;  %990 = vst [vmem:[#allocation7 + $0x1b0] sm:$0xff] %v766_v36  ;;  %v325_v50 = vld [vmem:[#allocation5 + $0x1e8] sm:$0xff]  ;;  %v102_v51 = vld [vmem:[#allocation2 + $0x1f0] sm:$0xff] }
  0x56   :  { %v769_v48 = vmax.f32 %v545_v37, 0.0  ;;  %v548_v49 = vadd.f32 %v324_v46, %v100_v45  ;;  %v326_v52 = vld [vmem:[#allocation5 + $0x1f0] sm:$0xff]  ;;  %991 = vst [vmem:[#allocation7 + $0x1b8] sm:$0xff] %v767_v41  ;;  %992 = vst [vmem:[#allocation7 + $0x1c0] sm:$0xff] %v768_v42  ;;  %v770_v53 = vmax.f32 %v546_v43, 0.0  ;;  %v549_v55 = vadd.f32 %v325_v50, %v101_v47  ;;  %v103_v57 = vld [vmem:[#allocation2 + $0x1f8] sm:$0xff] }
  0x57   :  { %v771_v54 = vmax.f32 %v547_v44, 0.0  ;;  %v550_v56 = vadd.f32 %v326_v52, %v102_v51  ;;  %v327_v58 = vld [vmem:[#allocation5 + $0x1f8] sm:$0xff]  ;;  %v104_v59 = vld [vmem:[#allocation2 + $0x200] sm:$0xff]  ;;  %v105_v63 = vld [vmem:[#allocation2 + $0x208] sm:$0xff] }
  0x58   :  { %993 = vst [vmem:[#allocation7 + $0x1c8] sm:$0xff] %v769_v48  ;;  %v772_v60 = vmax.f32 %v548_v49, 0.0  ;;  %v551_v61 = vadd.f32 %v327_v58, %v103_v57  ;;  %v328_v62 = vld [vmem:[#allocation5 + $0x200] sm:$0xff]  ;;  %v329_v0 = vld [vmem:[#allocation5 + $0x208] sm:$0xff]  ;;  %994 = vst [vmem:[#allocation7 + $0x1d0] sm:$0xff] %v770_v53  ;;  %v773_v1 = vmax.f32 %v549_v55, 0.0 }
  0x59   :  { %995 = vst [vmem:[#allocation7 + $0x1d8] sm:$0xff] %v771_v54  ;;  %v774_v2 = vmax.f32 %v550_v56, 0.0  ;;  %v552_v3 = vadd.f32 %v328_v62, %v104_v59  ;;  %v553_v4 = vadd.f32 %v329_v0, %v105_v63  ;;  %v106_v5 = vld [vmem:[#allocation2 + $0x210] sm:$0xff]  ;;  %v107_v7 = vld [vmem:[#allocation2 + $0x218] sm:$0xff]  ;;  %v108_v11 = vld [vmem:[#allocation2 + $0x220] sm:$0xff] }
  0x5a   :  { %v330_v6 = vld [vmem:[#allocation5 + $0x210] sm:$0xff]  ;;  %996 = vst [vmem:[#allocation7 + $0x1e0] sm:$0xff] %v772_v60  ;;  %v775_v8 = vmax.f32 %v551_v61, 0.0  ;;  %v331_v10 = vld [vmem:[#allocation5 + $0x218] sm:$0xff]  ;;  %v332_v12 = vld [vmem:[#allocation5 + $0x220] sm:$0xff] }
  0x5b   :  { %v554_v9 = vadd.f32 %v330_v6, %v106_v5  ;;  %997 = vst [vmem:[#allocation7 + $0x1e8] sm:$0xff] %v773_v1  ;;  %998 = vst [vmem:[#allocation7 + $0x1f0] sm:$0xff] %v774_v2  ;;  %v776_v13 = vmax.f32 %v552_v3, 0.0  ;;  %v777_v14 = vmax.f32 %v553_v4, 0.0  ;;  %v555_v15 = vadd.f32 %v331_v10, %v107_v7  ;;  %v109_v17 = vld [vmem:[#allocation2 + $0x228] sm:$0xff]  ;;  %v110_v19 = vld [vmem:[#allocation2 + $0x230] sm:$0xff] }
  0x5c   :  { %v556_v16 = vadd.f32 %v332_v12, %v108_v11  ;;  %v333_v18 = vld [vmem:[#allocation5 + $0x228] sm:$0xff]  ;;  %999 = vst [vmem:[#allocation7 + $0x1f8] sm:$0xff] %v775_v8  ;;  %v334_v22 = vld [vmem:[#allocation5 + $0x230] sm:$0xff]  ;;  %v111_v23 = vld [vmem:[#allocation2 + $0x238] sm:$0xff] }
  0x5d   :  { %v778_v20 = vmax.f32 %v554_v9, 0.0  ;;  %v557_v21 = vadd.f32 %v333_v18, %v109_v17  ;;  %v335_v24 = vld [vmem:[#allocation5 + $0x238] sm:$0xff]  ;;  %1000 = vst [vmem:[#allocation7 + $0x200] sm:$0xff] %v776_v13  ;;  %1001 = vst [vmem:[#allocation7 + $0x208] sm:$0xff] %v777_v14  ;;  %v779_v25 = vmax.f32 %v555_v15, 0.0  ;;  %v558_v27 = vadd.f32 %v334_v22, %v110_v19  ;;  %v112_v29 = vld [vmem:[#allocation2 + $0x240] sm:$0xff] }
  0x5e   :  { %v780_v26 = vmax.f32 %v556_v16, 0.0  ;;  %v559_v28 = vadd.f32 %v335_v24, %v111_v23  ;;  %v336_v30 = vld [vmem:[#allocation5 + $0x240] sm:$0xff]  ;;  %v113_v31 = vld [vmem:[#allocation2 + $0x248] sm:$0xff]  ;;  %v114_v35 = vld [vmem:[#allocation2 + $0x250] sm:$0xff] }
  0x5f   :  { %1002 = vst [vmem:[#allocation7 + $0x210] sm:$0xff] %v778_v20  ;;  %v781_v32 = vmax.f32 %v557_v21, 0.0  ;;  %v560_v33 = vadd.f32 %v336_v30, %v112_v29  ;;  %v337_v34 = vld [vmem:[#allocation5 + $0x248] sm:$0xff]  ;;  %v338_v36 = vld [vmem:[#allocation5 + $0x250] sm:$0xff]  ;;  %1003 = vst [vmem:[#allocation7 + $0x218] sm:$0xff] %v779_v25  ;;  %v782_v37 = vmax.f32 %v558_v27, 0.0 }
  0x60   :  { %1004 = vst [vmem:[#allocation7 + $0x220] sm:$0xff] %v780_v26  ;;  %v783_v38 = vmax.f32 %v559_v28, 0.0  ;;  %v561_v39 = vadd.f32 %v337_v34, %v113_v31  ;;  %v562_v40 = vadd.f32 %v338_v36, %v114_v35  ;;  %v115_v41 = vld [vmem:[#allocation2 + $0x258] sm:$0xff]  ;;  %v116_v43 = vld [vmem:[#allocation2 + $0x260] sm:$0xff]  ;;  %v117_v47 = vld [vmem:[#allocation2 + $0x268] sm:$0xff] }
  0x61   :  { %v339_v42 = vld [vmem:[#allocation5 + $0x258] sm:$0xff]  ;;  %1005 = vst [vmem:[#allocation7 + $0x228] sm:$0xff] %v781_v32  ;;  %v784_v44 = vmax.f32 %v560_v33, 0.0  ;;  %v340_v46 = vld [vmem:[#allocation5 + $0x260] sm:$0xff]  ;;  %v341_v48 = vld [vmem:[#allocation5 + $0x268] sm:$0xff] }
  0x62   :  { %v563_v45 = vadd.f32 %v339_v42, %v115_v41  ;;  %1006 = vst [vmem:[#allocation7 + $0x230] sm:$0xff] %v782_v37  ;;  %1007 = vst [vmem:[#allocation7 + $0x238] sm:$0xff] %v783_v38  ;;  %v785_v49 = vmax.f32 %v561_v39, 0.0  ;;  %v786_v50 = vmax.f32 %v562_v40, 0.0  ;;  %v564_v51 = vadd.f32 %v340_v46, %v116_v43  ;;  %v118_v53 = vld [vmem:[#allocation2 + $0x270] sm:$0xff]  ;;  %v119_v55 = vld [vmem:[#allocation2 + $0x278] sm:$0xff] }
  0x63   :  { %v565_v52 = vadd.f32 %v341_v48, %v117_v47  ;;  %v342_v54 = vld [vmem:[#allocation5 + $0x270] sm:$0xff]  ;;  %1008 = vst [vmem:[#allocation7 + $0x240] sm:$0xff] %v784_v44  ;;  %v343_v58 = vld [vmem:[#allocation5 + $0x278] sm:$0xff]  ;;  %v120_v59 = vld [vmem:[#allocation2 + $0x280] sm:$0xff] }
  0x64   :  { %v787_v56 = vmax.f32 %v563_v45, 0.0  ;;  %v566_v57 = vadd.f32 %v342_v54, %v118_v53  ;;  %v344_v60 = vld [vmem:[#allocation5 + $0x280] sm:$0xff]  ;;  %1009 = vst [vmem:[#allocation7 + $0x248] sm:$0xff] %v785_v49  ;;  %1010 = vst [vmem:[#allocation7 + $0x250] sm:$0xff] %v786_v50  ;;  %v788_v61 = vmax.f32 %v564_v51, 0.0  ;;  %v567_v63 = vadd.f32 %v343_v58, %v119_v55  ;;  %v121_v1 = vld [vmem:[#allocation2 + $0x288] sm:$0xff] }
  0x65   :  { %v789_v62 = vmax.f32 %v565_v52, 0.0  ;;  %v568_v0 = vadd.f32 %v344_v60, %v120_v59  ;;  %v345_v2 = vld [vmem:[#allocation5 + $0x288] sm:$0xff]  ;;  %v122_v3 = vld [vmem:[#allocation2 + $0x290] sm:$0xff]  ;;  %v123_v7 = vld [vmem:[#allocation2 + $0x298] sm:$0xff] }
  0x66   :  { %1011 = vst [vmem:[#allocation7 + $0x258] sm:$0xff] %v787_v56  ;;  %v790_v4 = vmax.f32 %v566_v57, 0.0  ;;  %v569_v5 = vadd.f32 %v345_v2, %v121_v1  ;;  %v346_v6 = vld [vmem:[#allocation5 + $0x290] sm:$0xff]  ;;  %v347_v8 = vld [vmem:[#allocation5 + $0x298] sm:$0xff]  ;;  %1012 = vst [vmem:[#allocation7 + $0x260] sm:$0xff] %v788_v61  ;;  %v791_v9 = vmax.f32 %v567_v63, 0.0 }
  0x67   :  { %1013 = vst [vmem:[#allocation7 + $0x268] sm:$0xff] %v789_v62  ;;  %v792_v10 = vmax.f32 %v568_v0, 0.0  ;;  %v570_v11 = vadd.f32 %v346_v6, %v122_v3  ;;  %v571_v12 = vadd.f32 %v347_v8, %v123_v7  ;;  %v124_v13 = vld [vmem:[#allocation2 + $0x2a0] sm:$0xff]  ;;  %v125_v15 = vld [vmem:[#allocation2 + $0x2a8] sm:$0xff]  ;;  %v126_v19 = vld [vmem:[#allocation2 + $0x2b0] sm:$0xff] }
  0x68   :  { %v348_v14 = vld [vmem:[#allocation5 + $0x2a0] sm:$0xff]  ;;  %1014 = vst [vmem:[#allocation7 + $0x270] sm:$0xff] %v790_v4  ;;  %v793_v16 = vmax.f32 %v569_v5, 0.0  ;;  %v349_v18 = vld [vmem:[#allocation5 + $0x2a8] sm:$0xff]  ;;  %v350_v20 = vld [vmem:[#allocation5 + $0x2b0] sm:$0xff] }
  0x69   :  { %v572_v17 = vadd.f32 %v348_v14, %v124_v13  ;;  %1015 = vst [vmem:[#allocation7 + $0x278] sm:$0xff] %v791_v9  ;;  %1016 = vst [vmem:[#allocation7 + $0x280] sm:$0xff] %v792_v10  ;;  %v794_v21 = vmax.f32 %v570_v11, 0.0  ;;  %v795_v22 = vmax.f32 %v571_v12, 0.0  ;;  %v573_v23 = vadd.f32 %v349_v18, %v125_v15  ;;  %v127_v25 = vld [vmem:[#allocation2 + $0x2b8] sm:$0xff]  ;;  %v128_v27 = vld [vmem:[#allocation2 + $0x2c0] sm:$0xff] }
  0x6a   :  { %v574_v24 = vadd.f32 %v350_v20, %v126_v19  ;;  %v351_v26 = vld [vmem:[#allocation5 + $0x2b8] sm:$0xff]  ;;  %1017 = vst [vmem:[#allocation7 + $0x288] sm:$0xff] %v793_v16  ;;  %v352_v30 = vld [vmem:[#allocation5 + $0x2c0] sm:$0xff]  ;;  %v129_v31 = vld [vmem:[#allocation2 + $0x2c8] sm:$0xff] }
  0x6b   :  { %v796_v28 = vmax.f32 %v572_v17, 0.0  ;;  %v575_v29 = vadd.f32 %v351_v26, %v127_v25  ;;  %v353_v32 = vld [vmem:[#allocation5 + $0x2c8] sm:$0xff]  ;;  %1018 = vst [vmem:[#allocation7 + $0x290] sm:$0xff] %v794_v21  ;;  %1019 = vst [vmem:[#allocation7 + $0x298] sm:$0xff] %v795_v22  ;;  %v797_v33 = vmax.f32 %v573_v23, 0.0  ;;  %v576_v35 = vadd.f32 %v352_v30, %v128_v27  ;;  %v130_v37 = vld [vmem:[#allocation2 + $0x2d0] sm:$0xff] }
  0x6c   :  { %v798_v34 = vmax.f32 %v574_v24, 0.0  ;;  %v577_v36 = vadd.f32 %v353_v32, %v129_v31  ;;  %v354_v38 = vld [vmem:[#allocation5 + $0x2d0] sm:$0xff]  ;;  %v131_v39 = vld [vmem:[#allocation2 + $0x2d8] sm:$0xff]  ;;  %v132_v43 = vld [vmem:[#allocation2 + $0x2e0] sm:$0xff] }
  0x6d   :  { %1020 = vst [vmem:[#allocation7 + $0x2a0] sm:$0xff] %v796_v28  ;;  %v799_v40 = vmax.f32 %v575_v29, 0.0  ;;  %v578_v41 = vadd.f32 %v354_v38, %v130_v37  ;;  %v355_v42 = vld [vmem:[#allocation5 + $0x2d8] sm:$0xff]  ;;  %v356_v44 = vld [vmem:[#allocation5 + $0x2e0] sm:$0xff]  ;;  %1021 = vst [vmem:[#allocation7 + $0x2a8] sm:$0xff] %v797_v33  ;;  %v800_v45 = vmax.f32 %v576_v35, 0.0 }
  0x6e   :  { %1022 = vst [vmem:[#allocation7 + $0x2b0] sm:$0xff] %v798_v34  ;;  %v801_v46 = vmax.f32 %v577_v36, 0.0  ;;  %v579_v47 = vadd.f32 %v355_v42, %v131_v39  ;;  %v580_v48 = vadd.f32 %v356_v44, %v132_v43  ;;  %v133_v49 = vld [vmem:[#allocation2 + $0x2e8] sm:$0xff]  ;;  %v134_v51 = vld [vmem:[#allocation2 + $0x2f0] sm:$0xff]  ;;  %v135_v55 = vld [vmem:[#allocation2 + $0x2f8] sm:$0xff] }
  0x6f   :  { %v357_v50 = vld [vmem:[#allocation5 + $0x2e8] sm:$0xff]  ;;  %1023 = vst [vmem:[#allocation7 + $0x2b8] sm:$0xff] %v799_v40  ;;  %v802_v52 = vmax.f32 %v578_v41, 0.0  ;;  %v358_v54 = vld [vmem:[#allocation5 + $0x2f0] sm:$0xff]  ;;  %v359_v56 = vld [vmem:[#allocation5 + $0x2f8] sm:$0xff] }
  0x70   :  { %v581_v53 = vadd.f32 %v357_v50, %v133_v49  ;;  %1024 = vst [vmem:[#allocation7 + $0x2c0] sm:$0xff] %v800_v45  ;;  %1025 = vst [vmem:[#allocation7 + $0x2c8] sm:$0xff] %v801_v46  ;;  %v803_v57 = vmax.f32 %v579_v47, 0.0  ;;  %v804_v58 = vmax.f32 %v580_v48, 0.0  ;;  %v582_v59 = vadd.f32 %v358_v54, %v134_v51  ;;  %v136_v61 = vld [vmem:[#allocation2 + $0x300] sm:$0xff]  ;;  %v137_v63 = vld [vmem:[#allocation2 + $0x308] sm:$0xff] }
  0x71   :  { %v583_v60 = vadd.f32 %v359_v56, %v135_v55  ;;  %v360_v62 = vld [vmem:[#allocation5 + $0x300] sm:$0xff]  ;;  %1026 = vst [vmem:[#allocation7 + $0x2d0] sm:$0xff] %v802_v52  ;;  %v361_v2 = vld [vmem:[#allocation5 + $0x308] sm:$0xff]  ;;  %v138_v3 = vld [vmem:[#allocation2 + $0x310] sm:$0xff] }
  0x72   :  { %v805_v0 = vmax.f32 %v581_v53, 0.0  ;;  %v584_v1 = vadd.f32 %v360_v62, %v136_v61  ;;  %v362_v4 = vld [vmem:[#allocation5 + $0x310] sm:$0xff]  ;;  %1027 = vst [vmem:[#allocation7 + $0x2d8] sm:$0xff] %v803_v57  ;;  %1028 = vst [vmem:[#allocation7 + $0x2e0] sm:$0xff] %v804_v58  ;;  %v806_v5 = vmax.f32 %v582_v59, 0.0  ;;  %v585_v7 = vadd.f32 %v361_v2, %v137_v63  ;;  %v139_v9 = vld [vmem:[#allocation2 + $0x318] sm:$0xff] }
  0x73   :  { %v807_v6 = vmax.f32 %v583_v60, 0.0  ;;  %v586_v8 = vadd.f32 %v362_v4, %v138_v3  ;;  %v363_v10 = vld [vmem:[#allocation5 + $0x318] sm:$0xff]  ;;  %v140_v11 = vld [vmem:[#allocation2 + $0x320] sm:$0xff]  ;;  %v141_v15 = vld [vmem:[#allocation2 + $0x328] sm:$0xff] }
  0x74   :  { %1029 = vst [vmem:[#allocation7 + $0x2e8] sm:$0xff] %v805_v0  ;;  %v808_v12 = vmax.f32 %v584_v1, 0.0  ;;  %v587_v13 = vadd.f32 %v363_v10, %v139_v9  ;;  %v364_v14 = vld [vmem:[#allocation5 + $0x320] sm:$0xff]  ;;  %v365_v16 = vld [vmem:[#allocation5 + $0x328] sm:$0xff]  ;;  %1030 = vst [vmem:[#allocation7 + $0x2f0] sm:$0xff] %v806_v5  ;;  %v809_v17 = vmax.f32 %v585_v7, 0.0 }
  0x75   :  { %1031 = vst [vmem:[#allocation7 + $0x2f8] sm:$0xff] %v807_v6  ;;  %v810_v18 = vmax.f32 %v586_v8, 0.0  ;;  %v588_v19 = vadd.f32 %v364_v14, %v140_v11  ;;  %v589_v20 = vadd.f32 %v365_v16, %v141_v15  ;;  %v142_v21 = vld [vmem:[#allocation2 + $0x330] sm:$0xff]  ;;  %v143_v23 = vld [vmem:[#allocation2 + $0x338] sm:$0xff]  ;;  %v144_v27 = vld [vmem:[#allocation2 + $0x340] sm:$0xff] }
  0x76   :  { %v366_v22 = vld [vmem:[#allocation5 + $0x330] sm:$0xff]  ;;  %1032 = vst [vmem:[#allocation7 + $0x300] sm:$0xff] %v808_v12  ;;  %v811_v24 = vmax.f32 %v587_v13, 0.0  ;;  %v367_v26 = vld [vmem:[#allocation5 + $0x338] sm:$0xff]  ;;  %v368_v28 = vld [vmem:[#allocation5 + $0x340] sm:$0xff] }
  0x77   :  { %v590_v25 = vadd.f32 %v366_v22, %v142_v21  ;;  %1033 = vst [vmem:[#allocation7 + $0x308] sm:$0xff] %v809_v17  ;;  %1034 = vst [vmem:[#allocation7 + $0x310] sm:$0xff] %v810_v18  ;;  %v812_v29 = vmax.f32 %v588_v19, 0.0  ;;  %v813_v30 = vmax.f32 %v589_v20, 0.0  ;;  %v591_v31 = vadd.f32 %v367_v26, %v143_v23  ;;  %v145_v33 = vld [vmem:[#allocation2 + $0x348] sm:$0xff]  ;;  %v146_v35 = vld [vmem:[#allocation2 + $0x350] sm:$0xff] }
  0x78   :  { %v592_v32 = vadd.f32 %v368_v28, %v144_v27  ;;  %v369_v34 = vld [vmem:[#allocation5 + $0x348] sm:$0xff]  ;;  %1035 = vst [vmem:[#allocation7 + $0x318] sm:$0xff] %v811_v24  ;;  %v370_v38 = vld [vmem:[#allocation5 + $0x350] sm:$0xff]  ;;  %v147_v39 = vld [vmem:[#allocation2 + $0x358] sm:$0xff] }
  0x79   :  { %v814_v36 = vmax.f32 %v590_v25, 0.0  ;;  %v593_v37 = vadd.f32 %v369_v34, %v145_v33  ;;  %v371_v40 = vld [vmem:[#allocation5 + $0x358] sm:$0xff]  ;;  %1036 = vst [vmem:[#allocation7 + $0x320] sm:$0xff] %v812_v29  ;;  %1037 = vst [vmem:[#allocation7 + $0x328] sm:$0xff] %v813_v30  ;;  %v815_v41 = vmax.f32 %v591_v31, 0.0  ;;  %v594_v43 = vadd.f32 %v370_v38, %v146_v35  ;;  %v148_v45 = vld [vmem:[#allocation2 + $0x360] sm:$0xff] }
  0x7a   :  { %v816_v42 = vmax.f32 %v592_v32, 0.0  ;;  %v595_v44 = vadd.f32 %v371_v40, %v147_v39  ;;  %v372_v46 = vld [vmem:[#allocation5 + $0x360] sm:$0xff]  ;;  %v149_v47 = vld [vmem:[#allocation2 + $0x368] sm:$0xff]  ;;  %v150_v51 = vld [vmem:[#allocation2 + $0x370] sm:$0xff] }
  0x7b   :  { %1038 = vst [vmem:[#allocation7 + $0x330] sm:$0xff] %v814_v36  ;;  %v817_v48 = vmax.f32 %v593_v37, 0.0  ;;  %v596_v49 = vadd.f32 %v372_v46, %v148_v45  ;;  %v373_v50 = vld [vmem:[#allocation5 + $0x368] sm:$0xff]  ;;  %v374_v52 = vld [vmem:[#allocation5 + $0x370] sm:$0xff]  ;;  %1039 = vst [vmem:[#allocation7 + $0x338] sm:$0xff] %v815_v41  ;;  %v818_v53 = vmax.f32 %v594_v43, 0.0 }
  0x7c   :  { %1040 = vst [vmem:[#allocation7 + $0x340] sm:$0xff] %v816_v42  ;;  %v819_v54 = vmax.f32 %v595_v44, 0.0  ;;  %v597_v55 = vadd.f32 %v373_v50, %v149_v47  ;;  %v598_v56 = vadd.f32 %v374_v52, %v150_v51  ;;  %v151_v57 = vld [vmem:[#allocation2 + $0x378] sm:$0xff]  ;;  %v152_v59 = vld [vmem:[#allocation2 + $0x380] sm:$0xff]  ;;  %v153_v63 = vld [vmem:[#allocation2 + $0x388] sm:$0xff] }
  0x7d   :  { %v375_v58 = vld [vmem:[#allocation5 + $0x378] sm:$0xff]  ;;  %1041 = vst [vmem:[#allocation7 + $0x348] sm:$0xff] %v817_v48  ;;  %v820_v60 = vmax.f32 %v596_v49, 0.0  ;;  %v376_v62 = vld [vmem:[#allocation5 + $0x380] sm:$0xff]  ;;  %v377_v0 = vld [vmem:[#allocation5 + $0x388] sm:$0xff] }
  0x7e   :  { %v599_v61 = vadd.f32 %v375_v58, %v151_v57  ;;  %1042 = vst [vmem:[#allocation7 + $0x350] sm:$0xff] %v818_v53  ;;  %1043 = vst [vmem:[#allocation7 + $0x358] sm:$0xff] %v819_v54  ;;  %v821_v1 = vmax.f32 %v597_v55, 0.0  ;;  %v822_v2 = vmax.f32 %v598_v56, 0.0  ;;  %v600_v3 = vadd.f32 %v376_v62, %v152_v59  ;;  %v154_v5 = vld [vmem:[#allocation2 + $0x390] sm:$0xff]  ;;  %v155_v7 = vld [vmem:[#allocation2 + $0x398] sm:$0xff] }
  0x7f   :  { %v601_v4 = vadd.f32 %v377_v0, %v153_v63  ;;  %v378_v6 = vld [vmem:[#allocation5 + $0x390] sm:$0xff]  ;;  %1044 = vst [vmem:[#allocation7 + $0x360] sm:$0xff] %v820_v60  ;;  %v379_v10 = vld [vmem:[#allocation5 + $0x398] sm:$0xff]  ;;  %v156_v11 = vld [vmem:[#allocation2 + $0x3a0] sm:$0xff] }
  0x80   :  { %v823_v8 = vmax.f32 %v599_v61, 0.0  ;;  %v602_v9 = vadd.f32 %v378_v6, %v154_v5  ;;  %v380_v12 = vld [vmem:[#allocation5 + $0x3a0] sm:$0xff]  ;;  %1045 = vst [vmem:[#allocation7 + $0x368] sm:$0xff] %v821_v1  ;;  %1046 = vst [vmem:[#allocation7 + $0x370] sm:$0xff] %v822_v2  ;;  %v824_v13 = vmax.f32 %v600_v3, 0.0  ;;  %v603_v15 = vadd.f32 %v379_v10, %v155_v7  ;;  %v157_v17 = vld [vmem:[#allocation2 + $0x3a8] sm:$0xff] }
  0x81   :  { %v825_v14 = vmax.f32 %v601_v4, 0.0  ;;  %v604_v16 = vadd.f32 %v380_v12, %v156_v11  ;;  %v381_v18 = vld [vmem:[#allocation5 + $0x3a8] sm:$0xff]  ;;  %v158_v19 = vld [vmem:[#allocation2 + $0x3b0] sm:$0xff]  ;;  %v159_v23 = vld [vmem:[#allocation2 + $0x3b8] sm:$0xff] }
  0x82   :  { %1047 = vst [vmem:[#allocation7 + $0x378] sm:$0xff] %v823_v8  ;;  %v826_v20 = vmax.f32 %v602_v9, 0.0  ;;  %v605_v21 = vadd.f32 %v381_v18, %v157_v17  ;;  %v382_v22 = vld [vmem:[#allocation5 + $0x3b0] sm:$0xff]  ;;  %v383_v24 = vld [vmem:[#allocation5 + $0x3b8] sm:$0xff]  ;;  %1048 = vst [vmem:[#allocation7 + $0x380] sm:$0xff] %v824_v13  ;;  %v827_v25 = vmax.f32 %v603_v15, 0.0 }
  0x83   :  { %1049 = vst [vmem:[#allocation7 + $0x388] sm:$0xff] %v825_v14  ;;  %v828_v26 = vmax.f32 %v604_v16, 0.0  ;;  %v606_v27 = vadd.f32 %v382_v22, %v158_v19  ;;  %v607_v28 = vadd.f32 %v383_v24, %v159_v23  ;;  %v160_v29 = vld [vmem:[#allocation2 + $0x3c0] sm:$0xff]  ;;  %v161_v31 = vld [vmem:[#allocation2 + $0x3c8] sm:$0xff]  ;;  %v162_v35 = vld [vmem:[#allocation2 + $0x3d0] sm:$0xff] }
  0x84   :  { %v384_v30 = vld [vmem:[#allocation5 + $0x3c0] sm:$0xff]  ;;  %1050 = vst [vmem:[#allocation7 + $0x390] sm:$0xff] %v826_v20  ;;  %v829_v32 = vmax.f32 %v605_v21, 0.0  ;;  %v385_v34 = vld [vmem:[#allocation5 + $0x3c8] sm:$0xff]  ;;  %v386_v36 = vld [vmem:[#allocation5 + $0x3d0] sm:$0xff] }
  0x85   :  { %v608_v33 = vadd.f32 %v384_v30, %v160_v29  ;;  %1051 = vst [vmem:[#allocation7 + $0x398] sm:$0xff] %v827_v25  ;;  %1052 = vst [vmem:[#allocation7 + $0x3a0] sm:$0xff] %v828_v26  ;;  %v830_v37 = vmax.f32 %v606_v27, 0.0  ;;  %v831_v38 = vmax.f32 %v607_v28, 0.0  ;;  %v609_v39 = vadd.f32 %v385_v34, %v161_v31  ;;  %v163_v41 = vld [vmem:[#allocation2 + $0x3d8] sm:$0xff]  ;;  %v164_v43 = vld [vmem:[#allocation2 + $0x3e0] sm:$0xff] }
  0x86   :  { %v610_v40 = vadd.f32 %v386_v36, %v162_v35  ;;  %v387_v42 = vld [vmem:[#allocation5 + $0x3d8] sm:$0xff]  ;;  %1053 = vst [vmem:[#allocation7 + $0x3a8] sm:$0xff] %v829_v32  ;;  %v388_v46 = vld [vmem:[#allocation5 + $0x3e0] sm:$0xff]  ;;  %v165_v47 = vld [vmem:[#allocation2 + $0x3e8] sm:$0xff] }
  0x87   :  { %v832_v44 = vmax.f32 %v608_v33, 0.0  ;;  %v611_v45 = vadd.f32 %v387_v42, %v163_v41  ;;  %v389_v48 = vld [vmem:[#allocation5 + $0x3e8] sm:$0xff]  ;;  %1054 = vst [vmem:[#allocation7 + $0x3b0] sm:$0xff] %v830_v37  ;;  %1055 = vst [vmem:[#allocation7 + $0x3b8] sm:$0xff] %v831_v38  ;;  %v833_v49 = vmax.f32 %v609_v39, 0.0  ;;  %v612_v51 = vadd.f32 %v388_v46, %v164_v43  ;;  %v166_v53 = vld [vmem:[#allocation2 + $0x3f0] sm:$0xff] }
  0x88   :  { %v834_v50 = vmax.f32 %v610_v40, 0.0  ;;  %v613_v52 = vadd.f32 %v389_v48, %v165_v47  ;;  %v390_v54 = vld [vmem:[#allocation5 + $0x3f0] sm:$0xff]  ;;  %v167_v55 = vld [vmem:[#allocation2 + $0x3f8] sm:$0xff]  ;;  %v168_v59 = vld [vmem:[#allocation2 + $0x400] sm:$0xff] }
  0x89   :  { %1056 = vst [vmem:[#allocation7 + $0x3c0] sm:$0xff] %v832_v44  ;;  %v835_v56 = vmax.f32 %v611_v45, 0.0  ;;  %v614_v57 = vadd.f32 %v390_v54, %v166_v53  ;;  %v391_v58 = vld [vmem:[#allocation5 + $0x3f8] sm:$0xff]  ;;  %v392_v60 = vld [vmem:[#allocation5 + $0x400] sm:$0xff]  ;;  %1057 = vst [vmem:[#allocation7 + $0x3c8] sm:$0xff] %v833_v49  ;;  %v836_v61 = vmax.f32 %v612_v51, 0.0 }
  0x8a   :  { %1058 = vst [vmem:[#allocation7 + $0x3d0] sm:$0xff] %v834_v50  ;;  %v837_v62 = vmax.f32 %v613_v52, 0.0  ;;  %v615_v63 = vadd.f32 %v391_v58, %v167_v55  ;;  %v616_v0 = vadd.f32 %v392_v60, %v168_v59  ;;  %v169_v1 = vld [vmem:[#allocation2 + $0x408] sm:$0xff]  ;;  %v170_v3 = vld [vmem:[#allocation2 + $0x410] sm:$0xff]  ;;  %v171_v7 = vld [vmem:[#allocation2 + $0x418] sm:$0xff] }
  0x8b   :  { %v393_v2 = vld [vmem:[#allocation5 + $0x408] sm:$0xff]  ;;  %1059 = vst [vmem:[#allocation7 + $0x3d8] sm:$0xff] %v835_v56  ;;  %v838_v4 = vmax.f32 %v614_v57, 0.0  ;;  %v394_v6 = vld [vmem:[#allocation5 + $0x410] sm:$0xff]  ;;  %v395_v8 = vld [vmem:[#allocation5 + $0x418] sm:$0xff] }
  0x8c   :  { %v617_v5 = vadd.f32 %v393_v2, %v169_v1  ;;  %1060 = vst [vmem:[#allocation7 + $0x3e0] sm:$0xff] %v836_v61  ;;  %1061 = vst [vmem:[#allocation7 + $0x3e8] sm:$0xff] %v837_v62  ;;  %v839_v9 = vmax.f32 %v615_v63, 0.0  ;;  %v840_v10 = vmax.f32 %v616_v0, 0.0  ;;  %v618_v11 = vadd.f32 %v394_v6, %v170_v3  ;;  %v172_v13 = vld [vmem:[#allocation2 + $0x420] sm:$0xff]  ;;  %v173_v15 = vld [vmem:[#allocation2 + $0x428] sm:$0xff] }
  0x8d   :  { %v619_v12 = vadd.f32 %v395_v8, %v171_v7  ;;  %v396_v14 = vld [vmem:[#allocation5 + $0x420] sm:$0xff]  ;;  %1062 = vst [vmem:[#allocation7 + $0x3f0] sm:$0xff] %v838_v4  ;;  %v397_v18 = vld [vmem:[#allocation5 + $0x428] sm:$0xff]  ;;  %v174_v19 = vld [vmem:[#allocation2 + $0x430] sm:$0xff] }
  0x8e   :  { %v841_v16 = vmax.f32 %v617_v5, 0.0  ;;  %v620_v17 = vadd.f32 %v396_v14, %v172_v13  ;;  %v398_v20 = vld [vmem:[#allocation5 + $0x430] sm:$0xff]  ;;  %1063 = vst [vmem:[#allocation7 + $0x3f8] sm:$0xff] %v839_v9  ;;  %1064 = vst [vmem:[#allocation7 + $0x400] sm:$0xff] %v840_v10  ;;  %v842_v21 = vmax.f32 %v618_v11, 0.0  ;;  %v621_v23 = vadd.f32 %v397_v18, %v173_v15  ;;  %v175_v25 = vld [vmem:[#allocation2 + $0x438] sm:$0xff] }
  0x8f   :  { %v843_v22 = vmax.f32 %v619_v12, 0.0  ;;  %v622_v24 = vadd.f32 %v398_v20, %v174_v19  ;;  %v399_v26 = vld [vmem:[#allocation5 + $0x438] sm:$0xff]  ;;  %v176_v27 = vld [vmem:[#allocation2 + $0x440] sm:$0xff]  ;;  %v177_v31 = vld [vmem:[#allocation2 + $0x448] sm:$0xff] }
  0x90   :  { %1065 = vst [vmem:[#allocation7 + $0x408] sm:$0xff] %v841_v16  ;;  %v844_v28 = vmax.f32 %v620_v17, 0.0  ;;  %v623_v29 = vadd.f32 %v399_v26, %v175_v25  ;;  %v400_v30 = vld [vmem:[#allocation5 + $0x440] sm:$0xff]  ;;  %v401_v32 = vld [vmem:[#allocation5 + $0x448] sm:$0xff]  ;;  %1066 = vst [vmem:[#allocation7 + $0x410] sm:$0xff] %v842_v21  ;;  %v845_v33 = vmax.f32 %v621_v23, 0.0 }
  0x91   :  { %1067 = vst [vmem:[#allocation7 + $0x418] sm:$0xff] %v843_v22  ;;  %v846_v34 = vmax.f32 %v622_v24, 0.0  ;;  %v624_v35 = vadd.f32 %v400_v30, %v176_v27  ;;  %v625_v36 = vadd.f32 %v401_v32, %v177_v31  ;;  %v178_v37 = vld [vmem:[#allocation2 + $0x450] sm:$0xff]  ;;  %v179_v39 = vld [vmem:[#allocation2 + $0x458] sm:$0xff]  ;;  %v180_v43 = vld [vmem:[#allocation2 + $0x460] sm:$0xff] }
  0x92   :  { %v402_v38 = vld [vmem:[#allocation5 + $0x450] sm:$0xff]  ;;  %1068 = vst [vmem:[#allocation7 + $0x420] sm:$0xff] %v844_v28  ;;  %v847_v40 = vmax.f32 %v623_v29, 0.0  ;;  %v403_v42 = vld [vmem:[#allocation5 + $0x458] sm:$0xff]  ;;  %v404_v44 = vld [vmem:[#allocation5 + $0x460] sm:$0xff] }
  0x93   :  { %v626_v41 = vadd.f32 %v402_v38, %v178_v37  ;;  %1069 = vst [vmem:[#allocation7 + $0x428] sm:$0xff] %v845_v33  ;;  %1070 = vst [vmem:[#allocation7 + $0x430] sm:$0xff] %v846_v34  ;;  %v848_v45 = vmax.f32 %v624_v35, 0.0  ;;  %v849_v46 = vmax.f32 %v625_v36, 0.0  ;;  %v627_v47 = vadd.f32 %v403_v42, %v179_v39  ;;  %v181_v49 = vld [vmem:[#allocation2 + $0x468] sm:$0xff]  ;;  %v182_v51 = vld [vmem:[#allocation2 + $0x470] sm:$0xff] }
  0x94   :  { %v628_v48 = vadd.f32 %v404_v44, %v180_v43  ;;  %v405_v50 = vld [vmem:[#allocation5 + $0x468] sm:$0xff]  ;;  %1071 = vst [vmem:[#allocation7 + $0x438] sm:$0xff] %v847_v40  ;;  %v406_v54 = vld [vmem:[#allocation5 + $0x470] sm:$0xff]  ;;  %v183_v55 = vld [vmem:[#allocation2 + $0x478] sm:$0xff] }
  0x95   :  { %v850_v52 = vmax.f32 %v626_v41, 0.0  ;;  %v629_v53 = vadd.f32 %v405_v50, %v181_v49  ;;  %v407_v56 = vld [vmem:[#allocation5 + $0x478] sm:$0xff]  ;;  %1072 = vst [vmem:[#allocation7 + $0x440] sm:$0xff] %v848_v45  ;;  %1073 = vst [vmem:[#allocation7 + $0x448] sm:$0xff] %v849_v46  ;;  %v851_v57 = vmax.f32 %v627_v47, 0.0  ;;  %v630_v59 = vadd.f32 %v406_v54, %v182_v51  ;;  %v184_v61 = vld [vmem:[#allocation2 + $0x480] sm:$0xff] }
  0x96   :  { %v852_v58 = vmax.f32 %v628_v48, 0.0  ;;  %v631_v60 = vadd.f32 %v407_v56, %v183_v55  ;;  %v408_v62 = vld [vmem:[#allocation5 + $0x480] sm:$0xff]  ;;  %v185_v63 = vld [vmem:[#allocation2 + $0x488] sm:$0xff]  ;;  %v186_v3 = vld [vmem:[#allocation2 + $0x490] sm:$0xff] }
  0x97   :  { %1074 = vst [vmem:[#allocation7 + $0x450] sm:$0xff] %v850_v52  ;;  %v853_v0 = vmax.f32 %v629_v53, 0.0  ;;  %v632_v1 = vadd.f32 %v408_v62, %v184_v61  ;;  %v409_v2 = vld [vmem:[#allocation5 + $0x488] sm:$0xff]  ;;  %v410_v4 = vld [vmem:[#allocation5 + $0x490] sm:$0xff]  ;;  %1075 = vst [vmem:[#allocation7 + $0x458] sm:$0xff] %v851_v57  ;;  %v854_v5 = vmax.f32 %v630_v59, 0.0 }
  0x98   :  { %1076 = vst [vmem:[#allocation7 + $0x460] sm:$0xff] %v852_v58  ;;  %v855_v6 = vmax.f32 %v631_v60, 0.0  ;;  %v633_v7 = vadd.f32 %v409_v2, %v185_v63  ;;  %v634_v8 = vadd.f32 %v410_v4, %v186_v3  ;;  %v187_v9 = vld [vmem:[#allocation2 + $0x498] sm:$0xff]  ;;  %v188_v11 = vld [vmem:[#allocation2 + $0x4a0] sm:$0xff]  ;;  %v189_v15 = vld [vmem:[#allocation2 + $0x4a8] sm:$0xff] }
  0x99   :  { %v411_v10 = vld [vmem:[#allocation5 + $0x498] sm:$0xff]  ;;  %1077 = vst [vmem:[#allocation7 + $0x468] sm:$0xff] %v853_v0  ;;  %v856_v12 = vmax.f32 %v632_v1, 0.0  ;;  %v412_v14 = vld [vmem:[#allocation5 + $0x4a0] sm:$0xff]  ;;  %v413_v16 = vld [vmem:[#allocation5 + $0x4a8] sm:$0xff] }
  0x9a   :  { %v635_v13 = vadd.f32 %v411_v10, %v187_v9  ;;  %1078 = vst [vmem:[#allocation7 + $0x470] sm:$0xff] %v854_v5  ;;  %1079 = vst [vmem:[#allocation7 + $0x478] sm:$0xff] %v855_v6  ;;  %v857_v17 = vmax.f32 %v633_v7, 0.0  ;;  %v858_v18 = vmax.f32 %v634_v8, 0.0  ;;  %v636_v19 = vadd.f32 %v412_v14, %v188_v11  ;;  %v190_v21 = vld [vmem:[#allocation2 + $0x4b0] sm:$0xff]  ;;  %v191_v23 = vld [vmem:[#allocation2 + $0x4b8] sm:$0xff] }
  0x9b   :  { %v637_v20 = vadd.f32 %v413_v16, %v189_v15  ;;  %v414_v22 = vld [vmem:[#allocation5 + $0x4b0] sm:$0xff]  ;;  %1080 = vst [vmem:[#allocation7 + $0x480] sm:$0xff] %v856_v12  ;;  %v415_v26 = vld [vmem:[#allocation5 + $0x4b8] sm:$0xff]  ;;  %v192_v27 = vld [vmem:[#allocation2 + $0x4c0] sm:$0xff] }
  0x9c   :  { %v859_v24 = vmax.f32 %v635_v13, 0.0  ;;  %v638_v25 = vadd.f32 %v414_v22, %v190_v21  ;;  %v416_v28 = vld [vmem:[#allocation5 + $0x4c0] sm:$0xff]  ;;  %1081 = vst [vmem:[#allocation7 + $0x488] sm:$0xff] %v857_v17  ;;  %1082 = vst [vmem:[#allocation7 + $0x490] sm:$0xff] %v858_v18  ;;  %v860_v29 = vmax.f32 %v636_v19, 0.0  ;;  %v639_v31 = vadd.f32 %v415_v26, %v191_v23  ;;  %v193_v33 = vld [vmem:[#allocation2 + $0x4c8] sm:$0xff] }
  0x9d   :  { %v861_v30 = vmax.f32 %v637_v20, 0.0  ;;  %v640_v32 = vadd.f32 %v416_v28, %v192_v27  ;;  %v417_v34 = vld [vmem:[#allocation5 + $0x4c8] sm:$0xff]  ;;  %v194_v35 = vld [vmem:[#allocation2 + $0x4d0] sm:$0xff]  ;;  %v195_v39 = vld [vmem:[#allocation2 + $0x4d8] sm:$0xff] }
  0x9e   :  { %1083 = vst [vmem:[#allocation7 + $0x498] sm:$0xff] %v859_v24  ;;  %v862_v36 = vmax.f32 %v638_v25, 0.0  ;;  %v641_v37 = vadd.f32 %v417_v34, %v193_v33  ;;  %v418_v38 = vld [vmem:[#allocation5 + $0x4d0] sm:$0xff]  ;;  %v419_v40 = vld [vmem:[#allocation5 + $0x4d8] sm:$0xff]  ;;  %1084 = vst [vmem:[#allocation7 + $0x4a0] sm:$0xff] %v860_v29  ;;  %v863_v41 = vmax.f32 %v639_v31, 0.0 }
  0x9f   :  { %1085 = vst [vmem:[#allocation7 + $0x4a8] sm:$0xff] %v861_v30  ;;  %v864_v42 = vmax.f32 %v640_v32, 0.0  ;;  %v642_v43 = vadd.f32 %v418_v38, %v194_v35  ;;  %v643_v44 = vadd.f32 %v419_v40, %v195_v39  ;;  %v196_v45 = vld [vmem:[#allocation2 + $0x4e0] sm:$0xff]  ;;  %v197_v47 = vld [vmem:[#allocation2 + $0x4e8] sm:$0xff]  ;;  %v198_v51 = vld [vmem:[#allocation2 + $0x4f0] sm:$0xff] }
  0xa0   :  { %v420_v46 = vld [vmem:[#allocation5 + $0x4e0] sm:$0xff]  ;;  %1086 = vst [vmem:[#allocation7 + $0x4b0] sm:$0xff] %v862_v36  ;;  %v865_v48 = vmax.f32 %v641_v37, 0.0  ;;  %v421_v50 = vld [vmem:[#allocation5 + $0x4e8] sm:$0xff]  ;;  %v422_v52 = vld [vmem:[#allocation5 + $0x4f0] sm:$0xff] }
  0xa1   :  { %v644_v49 = vadd.f32 %v420_v46, %v196_v45  ;;  %1087 = vst [vmem:[#allocation7 + $0x4b8] sm:$0xff] %v863_v41  ;;  %1088 = vst [vmem:[#allocation7 + $0x4c0] sm:$0xff] %v864_v42  ;;  %v866_v53 = vmax.f32 %v642_v43, 0.0  ;;  %v867_v54 = vmax.f32 %v643_v44, 0.0  ;;  %v645_v55 = vadd.f32 %v421_v50, %v197_v47  ;;  %v199_v57 = vld [vmem:[#allocation2 + $0x4f8] sm:$0xff]  ;;  %v200_v59 = vld [vmem:[#allocation2 + $0x500] sm:$0xff] }
  0xa2   :  { %v646_v56 = vadd.f32 %v422_v52, %v198_v51  ;;  %v423_v58 = vld [vmem:[#allocation5 + $0x4f8] sm:$0xff]  ;;  %1089 = vst [vmem:[#allocation7 + $0x4c8] sm:$0xff] %v865_v48  ;;  %v424_v62 = vld [vmem:[#allocation5 + $0x500] sm:$0xff]  ;;  %v201_v63 = vld [vmem:[#allocation2 + $0x508] sm:$0xff] }
  0xa3   :  { %v868_v60 = vmax.f32 %v644_v49, 0.0  ;;  %v647_v61 = vadd.f32 %v423_v58, %v199_v57  ;;  %v425_v0 = vld [vmem:[#allocation5 + $0x508] sm:$0xff]  ;;  %1090 = vst [vmem:[#allocation7 + $0x4d0] sm:$0xff] %v866_v53  ;;  %1091 = vst [vmem:[#allocation7 + $0x4d8] sm:$0xff] %v867_v54  ;;  %v869_v1 = vmax.f32 %v645_v55, 0.0  ;;  %v648_v3 = vadd.f32 %v424_v62, %v200_v59  ;;  %v202_v5 = vld [vmem:[#allocation2 + $0x510] sm:$0xff] }
  0xa4   :  { %v870_v2 = vmax.f32 %v646_v56, 0.0  ;;  %v649_v4 = vadd.f32 %v425_v0, %v201_v63  ;;  %v426_v6 = vld [vmem:[#allocation5 + $0x510] sm:$0xff]  ;;  %v203_v7 = vld [vmem:[#allocation2 + $0x518] sm:$0xff]  ;;  %v204_v11 = vld [vmem:[#allocation2 + $0x520] sm:$0xff] }
  0xa5   :  { %1092 = vst [vmem:[#allocation7 + $0x4e0] sm:$0xff] %v868_v60  ;;  %v871_v8 = vmax.f32 %v647_v61, 0.0  ;;  %v650_v9 = vadd.f32 %v426_v6, %v202_v5  ;;  %v427_v10 = vld [vmem:[#allocation5 + $0x518] sm:$0xff]  ;;  %v428_v12 = vld [vmem:[#allocation5 + $0x520] sm:$0xff]  ;;  %1093 = vst [vmem:[#allocation7 + $0x4e8] sm:$0xff] %v869_v1  ;;  %v872_v13 = vmax.f32 %v648_v3, 0.0 }
  0xa6   :  { %1094 = vst [vmem:[#allocation7 + $0x4f0] sm:$0xff] %v870_v2  ;;  %v873_v14 = vmax.f32 %v649_v4, 0.0  ;;  %v651_v15 = vadd.f32 %v427_v10, %v203_v7  ;;  %v652_v16 = vadd.f32 %v428_v12, %v204_v11  ;;  %v205_v17 = vld [vmem:[#allocation2 + $0x528] sm:$0xff]  ;;  %v206_v19 = vld [vmem:[#allocation2 + $0x530] sm:$0xff]  ;;  %v207_v23 = vld [vmem:[#allocation2 + $0x538] sm:$0xff] }
  0xa7   :  { %v429_v18 = vld [vmem:[#allocation5 + $0x528] sm:$0xff]  ;;  %1095 = vst [vmem:[#allocation7 + $0x4f8] sm:$0xff] %v871_v8  ;;  %v874_v20 = vmax.f32 %v650_v9, 0.0  ;;  %v430_v22 = vld [vmem:[#allocation5 + $0x530] sm:$0xff]  ;;  %v431_v24 = vld [vmem:[#allocation5 + $0x538] sm:$0xff] }
  0xa8   :  { %v653_v21 = vadd.f32 %v429_v18, %v205_v17  ;;  %1096 = vst [vmem:[#allocation7 + $0x500] sm:$0xff] %v872_v13  ;;  %1097 = vst [vmem:[#allocation7 + $0x508] sm:$0xff] %v873_v14  ;;  %v875_v25 = vmax.f32 %v651_v15, 0.0  ;;  %v876_v26 = vmax.f32 %v652_v16, 0.0  ;;  %v654_v27 = vadd.f32 %v430_v22, %v206_v19  ;;  %v208_v29 = vld [vmem:[#allocation2 + $0x540] sm:$0xff]  ;;  %v209_v31 = vld [vmem:[#allocation2 + $0x548] sm:$0xff] }
  0xa9   :  { %v655_v28 = vadd.f32 %v431_v24, %v207_v23  ;;  %v432_v30 = vld [vmem:[#allocation5 + $0x540] sm:$0xff]  ;;  %1098 = vst [vmem:[#allocation7 + $0x510] sm:$0xff] %v874_v20  ;;  %v433_v34 = vld [vmem:[#allocation5 + $0x548] sm:$0xff]  ;;  %v210_v35 = vld [vmem:[#allocation2 + $0x550] sm:$0xff] }
  0xaa   :  { %v877_v32 = vmax.f32 %v653_v21, 0.0  ;;  %v656_v33 = vadd.f32 %v432_v30, %v208_v29  ;;  %v434_v36 = vld [vmem:[#allocation5 + $0x550] sm:$0xff]  ;;  %1099 = vst [vmem:[#allocation7 + $0x518] sm:$0xff] %v875_v25  ;;  %1100 = vst [vmem:[#allocation7 + $0x520] sm:$0xff] %v876_v26  ;;  %v878_v37 = vmax.f32 %v654_v27, 0.0  ;;  %v657_v39 = vadd.f32 %v433_v34, %v209_v31  ;;  %v211_v41 = vld [vmem:[#allocation2 + $0x558] sm:$0xff] }
  0xab   :  { %v879_v38 = vmax.f32 %v655_v28, 0.0  ;;  %v658_v40 = vadd.f32 %v434_v36, %v210_v35  ;;  %v435_v42 = vld [vmem:[#allocation5 + $0x558] sm:$0xff]  ;;  %v212_v43 = vld [vmem:[#allocation2 + $0x560] sm:$0xff]  ;;  %v213_v47 = vld [vmem:[#allocation2 + $0x568] sm:$0xff] }
  0xac   :  { %1101 = vst [vmem:[#allocation7 + $0x528] sm:$0xff] %v877_v32  ;;  %v880_v44 = vmax.f32 %v656_v33, 0.0  ;;  %v659_v45 = vadd.f32 %v435_v42, %v211_v41  ;;  %v436_v46 = vld [vmem:[#allocation5 + $0x560] sm:$0xff]  ;;  %v437_v48 = vld [vmem:[#allocation5 + $0x568] sm:$0xff]  ;;  %1102 = vst [vmem:[#allocation7 + $0x530] sm:$0xff] %v878_v37  ;;  %v881_v49 = vmax.f32 %v657_v39, 0.0 }
  0xad   :  { %1103 = vst [vmem:[#allocation7 + $0x538] sm:$0xff] %v879_v38  ;;  %v882_v50 = vmax.f32 %v658_v40, 0.0  ;;  %v660_v51 = vadd.f32 %v436_v46, %v212_v43  ;;  %v661_v52 = vadd.f32 %v437_v48, %v213_v47  ;;  %v214_v53 = vld [vmem:[#allocation2 + $0x570] sm:$0xff]  ;;  %v215_v55 = vld [vmem:[#allocation2 + $0x578] sm:$0xff]  ;;  %v216_v59 = vld [vmem:[#allocation2 + $0x580] sm:$0xff] }
  0xae   :  { %v438_v54 = vld [vmem:[#allocation5 + $0x570] sm:$0xff]  ;;  %1104 = vst [vmem:[#allocation7 + $0x540] sm:$0xff] %v880_v44  ;;  %v883_v56 = vmax.f32 %v659_v45, 0.0  ;;  %v439_v58 = vld [vmem:[#allocation5 + $0x578] sm:$0xff]  ;;  %v440_v60 = vld [vmem:[#allocation5 + $0x580] sm:$0xff] }
  0xaf   :  { %v662_v57 = vadd.f32 %v438_v54, %v214_v53  ;;  %1105 = vst [vmem:[#allocation7 + $0x548] sm:$0xff] %v881_v49  ;;  %1106 = vst [vmem:[#allocation7 + $0x550] sm:$0xff] %v882_v50  ;;  %v884_v61 = vmax.f32 %v660_v51, 0.0  ;;  %v885_v62 = vmax.f32 %v661_v52, 0.0  ;;  %v663_v63 = vadd.f32 %v439_v58, %v215_v55  ;;  %v217_v1 = vld [vmem:[#allocation2 + $0x588] sm:$0xff]  ;;  %v218_v3 = vld [vmem:[#allocation2 + $0x590] sm:$0xff] }
  0xb0   :  { %v664_v0 = vadd.f32 %v440_v60, %v216_v59  ;;  %v441_v2 = vld [vmem:[#allocation5 + $0x588] sm:$0xff]  ;;  %1107 = vst [vmem:[#allocation7 + $0x558] sm:$0xff] %v883_v56  ;;  %v442_v6 = vld [vmem:[#allocation5 + $0x590] sm:$0xff]  ;;  %v219_v7 = vld [vmem:[#allocation2 + $0x598] sm:$0xff] }
  0xb1   :  { %v886_v4 = vmax.f32 %v662_v57, 0.0  ;;  %v665_v5 = vadd.f32 %v441_v2, %v217_v1  ;;  %v443_v8 = vld [vmem:[#allocation5 + $0x598] sm:$0xff]  ;;  %1108 = vst [vmem:[#allocation7 + $0x560] sm:$0xff] %v884_v61  ;;  %1109 = vst [vmem:[#allocation7 + $0x568] sm:$0xff] %v885_v62  ;;  %v887_v9 = vmax.f32 %v663_v63, 0.0  ;;  %v666_v11 = vadd.f32 %v442_v6, %v218_v3  ;;  %v220_v13 = vld [vmem:[#allocation2 + $0x5a0] sm:$0xff] }
  0xb2   :  { %v888_v10 = vmax.f32 %v664_v0, 0.0  ;;  %v667_v12 = vadd.f32 %v443_v8, %v219_v7  ;;  %v444_v14 = vld [vmem:[#allocation5 + $0x5a0] sm:$0xff]  ;;  %v221_v15 = vld [vmem:[#allocation2 + $0x5a8] sm:$0xff]  ;;  %v222_v19 = vld [vmem:[#allocation2 + $0x5b0] sm:$0xff] }
  0xb3   :  { %1110 = vst [vmem:[#allocation7 + $0x570] sm:$0xff] %v886_v4  ;;  %v889_v16 = vmax.f32 %v665_v5, 0.0  ;;  %v668_v17 = vadd.f32 %v444_v14, %v220_v13  ;;  %v445_v18 = vld [vmem:[#allocation5 + $0x5a8] sm:$0xff]  ;;  %v446_v20 = vld [vmem:[#allocation5 + $0x5b0] sm:$0xff]  ;;  %1111 = vst [vmem:[#allocation7 + $0x578] sm:$0xff] %v887_v9  ;;  %v890_v21 = vmax.f32 %v666_v11, 0.0 }
  0xb4   :  { %1112 = vst [vmem:[#allocation7 + $0x580] sm:$0xff] %v888_v10  ;;  %v891_v22 = vmax.f32 %v667_v12, 0.0  ;;  %v669_v23 = vadd.f32 %v445_v18, %v221_v15  ;;  %v670_v24 = vadd.f32 %v446_v20, %v222_v19  ;;  %v223_v25 = vld [vmem:[#allocation2 + $0x5b8] sm:$0xff]  ;;  %v224_v27 = vld [vmem:[#allocation2 + $0x5c0] sm:$0xff]  ;;  %v225_v31 = vld [vmem:[#allocation2 + $0x5c8] sm:$0xff] }
  0xb5   :  { %v447_v26 = vld [vmem:[#allocation5 + $0x5b8] sm:$0xff]  ;;  %1113 = vst [vmem:[#allocation7 + $0x588] sm:$0xff] %v889_v16  ;;  %v892_v28 = vmax.f32 %v668_v17, 0.0  ;;  %v448_v30 = vld [vmem:[#allocation5 + $0x5c0] sm:$0xff]  ;;  %v449_v32 = vld [vmem:[#allocation5 + $0x5c8] sm:$0xff] }
  0xb6   :  { %v671_v29 = vadd.f32 %v447_v26, %v223_v25  ;;  %1114 = vst [vmem:[#allocation7 + $0x590] sm:$0xff] %v890_v21  ;;  %1115 = vst [vmem:[#allocation7 + $0x598] sm:$0xff] %v891_v22  ;;  %v893_v33 = vmax.f32 %v669_v23, 0.0  ;;  %v894_v34 = vmax.f32 %v670_v24, 0.0  ;;  %v672_v35 = vadd.f32 %v448_v30, %v224_v27  ;;  %v226_v37 = vld [vmem:[#allocation2 + $0x5d0] sm:$0xff]  ;;  %v227_v39 = vld [vmem:[#allocation2 + $0x5d8] sm:$0xff] }
  0xb7   :  { %v673_v36 = vadd.f32 %v449_v32, %v225_v31  ;;  %v450_v38 = vld [vmem:[#allocation5 + $0x5d0] sm:$0xff]  ;;  %1116 = vst [vmem:[#allocation7 + $0x5a0] sm:$0xff] %v892_v28  ;;  %v451_v42 = vld [vmem:[#allocation5 + $0x5d8] sm:$0xff]  ;;  %v228_v43 = vld [vmem:[#allocation2 + $0x5e0] sm:$0xff] }
  0xb8   :  { %v895_v40 = vmax.f32 %v671_v29, 0.0  ;;  %v674_v41 = vadd.f32 %v450_v38, %v226_v37  ;;  %v452_v44 = vld [vmem:[#allocation5 + $0x5e0] sm:$0xff]  ;;  %1117 = vst [vmem:[#allocation7 + $0x5a8] sm:$0xff] %v893_v33  ;;  %1118 = vst [vmem:[#allocation7 + $0x5b0] sm:$0xff] %v894_v34  ;;  %v896_v45 = vmax.f32 %v672_v35, 0.0  ;;  %v675_v47 = vadd.f32 %v451_v42, %v227_v39  ;;  %v229_v49 = vld [vmem:[#allocation2 + $0x5e8] sm:$0xff] }
  0xb9   :  { %v897_v46 = vmax.f32 %v673_v36, 0.0  ;;  %v676_v48 = vadd.f32 %v452_v44, %v228_v43  ;;  %v453_v50 = vld [vmem:[#allocation5 + $0x5e8] sm:$0xff]  ;;  %v230_v51 = vld [vmem:[#allocation2 + $0x5f0] sm:$0xff]  ;;  %v231_v55 = vld [vmem:[#allocation2 + $0x5f8] sm:$0xff] }
  0xba   :  { %1119 = vst [vmem:[#allocation7 + $0x5b8] sm:$0xff] %v895_v40  ;;  %v898_v52 = vmax.f32 %v674_v41, 0.0  ;;  %v677_v53 = vadd.f32 %v453_v50, %v229_v49  ;;  %v454_v54 = vld [vmem:[#allocation5 + $0x5f0] sm:$0xff]  ;;  %v455_v56 = vld [vmem:[#allocation5 + $0x5f8] sm:$0xff]  ;;  %1120 = vst [vmem:[#allocation7 + $0x5c0] sm:$0xff] %v896_v45  ;;  %v899_v57 = vmax.f32 %v675_v47, 0.0 }
  0xbb   :  { %1121 = vst [vmem:[#allocation7 + $0x5c8] sm:$0xff] %v897_v46  ;;  %v900_v58 = vmax.f32 %v676_v48, 0.0  ;;  %v678_v59 = vadd.f32 %v454_v54, %v230_v51  ;;  %v679_v60 = vadd.f32 %v455_v56, %v231_v55  ;;  %v232_v61 = vld [vmem:[#allocation2 + $0x600] sm:$0xff]  ;;  %v233_v63 = vld [vmem:[#allocation2 + $0x608] sm:$0xff]  ;;  %v234_v3 = vld [vmem:[#allocation2 + $0x610] sm:$0xff] }
  0xbc   :  { %v456_v62 = vld [vmem:[#allocation5 + $0x600] sm:$0xff]  ;;  %1122 = vst [vmem:[#allocation7 + $0x5d0] sm:$0xff] %v898_v52  ;;  %v901_v0 = vmax.f32 %v677_v53, 0.0  ;;  %v457_v2 = vld [vmem:[#allocation5 + $0x608] sm:$0xff]  ;;  %v458_v4 = vld [vmem:[#allocation5 + $0x610] sm:$0xff] }
  0xbd   :  { %v680_v1 = vadd.f32 %v456_v62, %v232_v61  ;;  %1123 = vst [vmem:[#allocation7 + $0x5d8] sm:$0xff] %v899_v57  ;;  %1124 = vst [vmem:[#allocation7 + $0x5e0] sm:$0xff] %v900_v58  ;;  %v902_v5 = vmax.f32 %v678_v59, 0.0  ;;  %v903_v6 = vmax.f32 %v679_v60, 0.0  ;;  %v681_v7 = vadd.f32 %v457_v2, %v233_v63  ;;  %v235_v9 = vld [vmem:[#allocation2 + $0x618] sm:$0xff]  ;;  %v236_v11 = vld [vmem:[#allocation2 + $0x620] sm:$0xff] }
  0xbe   :  { %v682_v8 = vadd.f32 %v458_v4, %v234_v3  ;;  %v459_v10 = vld [vmem:[#allocation5 + $0x618] sm:$0xff]  ;;  %1125 = vst [vmem:[#allocation7 + $0x5e8] sm:$0xff] %v901_v0  ;;  %v460_v14 = vld [vmem:[#allocation5 + $0x620] sm:$0xff]  ;;  %v237_v15 = vld [vmem:[#allocation2 + $0x628] sm:$0xff] }
  0xbf   :  { %v904_v12 = vmax.f32 %v680_v1, 0.0  ;;  %v683_v13 = vadd.f32 %v459_v10, %v235_v9  ;;  %v461_v16 = vld [vmem:[#allocation5 + $0x628] sm:$0xff]  ;;  %1126 = vst [vmem:[#allocation7 + $0x5f0] sm:$0xff] %v902_v5  ;;  %1127 = vst [vmem:[#allocation7 + $0x5f8] sm:$0xff] %v903_v6  ;;  %v905_v17 = vmax.f32 %v681_v7, 0.0  ;;  %v684_v19 = vadd.f32 %v460_v14, %v236_v11  ;;  %v238_v21 = vld [vmem:[#allocation2 + $0x630] sm:$0xff] }
  0xc0   :  { %v906_v18 = vmax.f32 %v682_v8, 0.0  ;;  %v685_v20 = vadd.f32 %v461_v16, %v237_v15  ;;  %v462_v22 = vld [vmem:[#allocation5 + $0x630] sm:$0xff]  ;;  %v239_v23 = vld [vmem:[#allocation2 + $0x638] sm:$0xff]  ;;  %v240_v27 = vld [vmem:[#allocation2 + $0x640] sm:$0xff] }
  0xc1   :  { %1128 = vst [vmem:[#allocation7 + $0x600] sm:$0xff] %v904_v12  ;;  %v907_v24 = vmax.f32 %v683_v13, 0.0  ;;  %v686_v25 = vadd.f32 %v462_v22, %v238_v21  ;;  %v463_v26 = vld [vmem:[#allocation5 + $0x638] sm:$0xff]  ;;  %v464_v28 = vld [vmem:[#allocation5 + $0x640] sm:$0xff]  ;;  %1129 = vst [vmem:[#allocation7 + $0x608] sm:$0xff] %v905_v17  ;;  %v908_v29 = vmax.f32 %v684_v19, 0.0 }
  0xc2   :  { %1130 = vst [vmem:[#allocation7 + $0x610] sm:$0xff] %v906_v18  ;;  %v909_v30 = vmax.f32 %v685_v20, 0.0  ;;  %v687_v31 = vadd.f32 %v463_v26, %v239_v23  ;;  %v688_v32 = vadd.f32 %v464_v28, %v240_v27  ;;  %v241_v33 = vld [vmem:[#allocation2 + $0x648] sm:$0xff]  ;;  %v242_v35 = vld [vmem:[#allocation2 + $0x650] sm:$0xff]  ;;  %v243_v39 = vld [vmem:[#allocation2 + $0x658] sm:$0xff] }
  0xc3   :  { %v465_v34 = vld [vmem:[#allocation5 + $0x648] sm:$0xff]  ;;  %1131 = vst [vmem:[#allocation7 + $0x618] sm:$0xff] %v907_v24  ;;  %v910_v36 = vmax.f32 %v686_v25, 0.0  ;;  %v466_v38 = vld [vmem:[#allocation5 + $0x650] sm:$0xff]  ;;  %v467_v40 = vld [vmem:[#allocation5 + $0x658] sm:$0xff] }
  0xc4   :  { %v689_v37 = vadd.f32 %v465_v34, %v241_v33  ;;  %1132 = vst [vmem:[#allocation7 + $0x620] sm:$0xff] %v908_v29  ;;  %1133 = vst [vmem:[#allocation7 + $0x628] sm:$0xff] %v909_v30  ;;  %v911_v41 = vmax.f32 %v687_v31, 0.0  ;;  %v912_v42 = vmax.f32 %v688_v32, 0.0  ;;  %v690_v43 = vadd.f32 %v466_v38, %v242_v35  ;;  %v244_v45 = vld [vmem:[#allocation2 + $0x660] sm:$0xff]  ;;  %v245_v47 = vld [vmem:[#allocation2 + $0x668] sm:$0xff] }
  0xc5   :  { %v691_v44 = vadd.f32 %v467_v40, %v243_v39  ;;  %v468_v46 = vld [vmem:[#allocation5 + $0x660] sm:$0xff]  ;;  %1134 = vst [vmem:[#allocation7 + $0x630] sm:$0xff] %v910_v36  ;;  %v469_v50 = vld [vmem:[#allocation5 + $0x668] sm:$0xff]  ;;  %v246_v51 = vld [vmem:[#allocation2 + $0x670] sm:$0xff] }
  0xc6   :  { %v913_v48 = vmax.f32 %v689_v37, 0.0  ;;  %v692_v49 = vadd.f32 %v468_v46, %v244_v45  ;;  %v470_v52 = vld [vmem:[#allocation5 + $0x670] sm:$0xff]  ;;  %1135 = vst [vmem:[#allocation7 + $0x638] sm:$0xff] %v911_v41  ;;  %1136 = vst [vmem:[#allocation7 + $0x640] sm:$0xff] %v912_v42  ;;  %v914_v53 = vmax.f32 %v690_v43, 0.0  ;;  %v693_v55 = vadd.f32 %v469_v50, %v245_v47  ;;  %v247_v57 = vld [vmem:[#allocation2 + $0x678] sm:$0xff] }
  0xc7   :  { %v915_v54 = vmax.f32 %v691_v44, 0.0  ;;  %v694_v56 = vadd.f32 %v470_v52, %v246_v51  ;;  %v471_v58 = vld [vmem:[#allocation5 + $0x678] sm:$0xff]  ;;  %v248_v59 = vld [vmem:[#allocation2 + $0x680] sm:$0xff]  ;;  %v249_v63 = vld [vmem:[#allocation2 + $0x688] sm:$0xff] }
  0xc8   :  { %1137 = vst [vmem:[#allocation7 + $0x648] sm:$0xff] %v913_v48  ;;  %v916_v60 = vmax.f32 %v692_v49, 0.0  ;;  %v695_v61 = vadd.f32 %v471_v58, %v247_v57  ;;  %v472_v62 = vld [vmem:[#allocation5 + $0x680] sm:$0xff]  ;;  %v473_v0 = vld [vmem:[#allocation5 + $0x688] sm:$0xff]  ;;  %1138 = vst [vmem:[#allocation7 + $0x650] sm:$0xff] %v914_v53  ;;  %v917_v1 = vmax.f32 %v693_v55, 0.0 }
  0xc9   :  { %1139 = vst [vmem:[#allocation7 + $0x658] sm:$0xff] %v915_v54  ;;  %v918_v2 = vmax.f32 %v694_v56, 0.0  ;;  %v696_v3 = vadd.f32 %v472_v62, %v248_v59  ;;  %v697_v4 = vadd.f32 %v473_v0, %v249_v63  ;;  %v250_v5 = vld [vmem:[#allocation2 + $0x690] sm:$0xff]  ;;  %v251_v7 = vld [vmem:[#allocation2 + $0x698] sm:$0xff]  ;;  %v252_v11 = vld [vmem:[#allocation2 + $0x6a0] sm:$0xff] }
  0xca   :  { %v474_v6 = vld [vmem:[#allocation5 + $0x690] sm:$0xff]  ;;  %1140 = vst [vmem:[#allocation7 + $0x660] sm:$0xff] %v916_v60  ;;  %v919_v8 = vmax.f32 %v695_v61, 0.0  ;;  %v475_v10 = vld [vmem:[#allocation5 + $0x698] sm:$0xff]  ;;  %v476_v12 = vld [vmem:[#allocation5 + $0x6a0] sm:$0xff] }
  0xcb   :  { %v698_v9 = vadd.f32 %v474_v6, %v250_v5  ;;  %1141 = vst [vmem:[#allocation7 + $0x668] sm:$0xff] %v917_v1  ;;  %1142 = vst [vmem:[#allocation7 + $0x670] sm:$0xff] %v918_v2  ;;  %v920_v13 = vmax.f32 %v696_v3, 0.0  ;;  %v921_v14 = vmax.f32 %v697_v4, 0.0  ;;  %v699_v15 = vadd.f32 %v475_v10, %v251_v7  ;;  %v253_v17 = vld [vmem:[#allocation2 + $0x6a8] sm:$0xff]  ;;  %v254_v19 = vld [vmem:[#allocation2 + $0x6b0] sm:$0xff] }
  0xcc   :  { %v700_v16 = vadd.f32 %v476_v12, %v252_v11  ;;  %v477_v18 = vld [vmem:[#allocation5 + $0x6a8] sm:$0xff]  ;;  %1143 = vst [vmem:[#allocation7 + $0x678] sm:$0xff] %v919_v8  ;;  %v478_v22 = vld [vmem:[#allocation5 + $0x6b0] sm:$0xff]  ;;  %v255_v23 = vld [vmem:[#allocation2 + $0x6b8] sm:$0xff] }
  0xcd   :  { %v922_v20 = vmax.f32 %v698_v9, 0.0  ;;  %v701_v21 = vadd.f32 %v477_v18, %v253_v17  ;;  %v479_v24 = vld [vmem:[#allocation5 + $0x6b8] sm:$0xff]  ;;  %1144 = vst [vmem:[#allocation7 + $0x680] sm:$0xff] %v920_v13  ;;  %1145 = vst [vmem:[#allocation7 + $0x688] sm:$0xff] %v921_v14  ;;  %v923_v25 = vmax.f32 %v699_v15, 0.0  ;;  %v702_v27 = vadd.f32 %v478_v22, %v254_v19  ;;  %v256_v29 = vld [vmem:[#allocation2 + $0x6c0] sm:$0xff] }
  0xce   :  { %v924_v26 = vmax.f32 %v700_v16, 0.0  ;;  %v703_v28 = vadd.f32 %v479_v24, %v255_v23  ;;  %v480_v30 = vld [vmem:[#allocation5 + $0x6c0] sm:$0xff]  ;;  %v257_v31 = vld [vmem:[#allocation2 + $0x6c8] sm:$0xff]  ;;  %v258_v35 = vld [vmem:[#allocation2 + $0x6d0] sm:$0xff] }
  0xcf   :  { %1146 = vst [vmem:[#allocation7 + $0x690] sm:$0xff] %v922_v20  ;;  %v925_v32 = vmax.f32 %v701_v21, 0.0  ;;  %v704_v33 = vadd.f32 %v480_v30, %v256_v29  ;;  %v481_v34 = vld [vmem:[#allocation5 + $0x6c8] sm:$0xff]  ;;  %v482_v36 = vld [vmem:[#allocation5 + $0x6d0] sm:$0xff]  ;;  %1147 = vst [vmem:[#allocation7 + $0x698] sm:$0xff] %v923_v25  ;;  %v926_v37 = vmax.f32 %v702_v27, 0.0 }
  0xd0   :  { %1148 = vst [vmem:[#allocation7 + $0x6a0] sm:$0xff] %v924_v26  ;;  %v927_v38 = vmax.f32 %v703_v28, 0.0  ;;  %v705_v39 = vadd.f32 %v481_v34, %v257_v31  ;;  %v706_v40 = vadd.f32 %v482_v36, %v258_v35  ;;  %v259_v41 = vld [vmem:[#allocation2 + $0x6d8] sm:$0xff]  ;;  %v260_v43 = vld [vmem:[#allocation2 + $0x6e0] sm:$0x1] }
  0xd1   :  { %v483_v42 = vld [vmem:[#allocation5 + $0x6d8] sm:$0xff]  ;;  %1149 = vst [vmem:[#allocation7 + $0x6a8] sm:$0xff] %v925_v32  ;;  %v928_v44 = vmax.f32 %v704_v33, 0.0  ;;  %v484_v46 = vld [vmem:[#allocation5 + $0x6e0] sm:$0x1]  ;;  %1150 = vst [vmem:[#allocation7 + $0x6b0] sm:$0xff] %v926_v37 }
  0xd2   :  { %v707_v45 = vadd.f32 %v483_v42, %v259_v41  ;;  %v261_v47 = vld [vmem:[#allocation2 + $0x6e8] sm:$0x1]  ;;  %1151 = vst [vmem:[#allocation7 + $0x6b8] sm:$0xff] %v927_v38  ;;  %v929_v48 = vmax.f32 %v705_v39, 0.0  ;;  %v930_v49 = vmax.f32 %v706_v40, 0.0  ;;  %v708_v50 = vadd.f32 %v484_v46, %v260_v43 }
  0xd3   :  { %v485_v51 = vld [vmem:[#allocation5 + $0x6e8] sm:$0x1]  ;;  %v262_v52 = vld [vmem:[#allocation2 + $0x6f0] sm:$0x1]  ;;  %1152 = vst [vmem:[#allocation7 + $0x6c0] sm:$0xff] %v928_v44 }
  0xd4   :  { %v931_v53 = vmax.f32 %v707_v45, 0.0  ;;  %v709_v54 = vadd.f32 %v485_v51, %v261_v47  ;;  %v486_v55 = vld [vmem:[#allocation5 + $0x6f0] sm:$0x1]  ;;  %v263_v56 = vld [vmem:[#allocation2 + $0x6f8] sm:$0x1]  ;;  %1153 = vst [vmem:[#allocation7 + $0x6c8] sm:$0xff] %v929_v48 }
  0xd5   :  { %1154 = vst [vmem:[#allocation7 + $0x6d0] sm:$0xff] %v930_v49  ;;  %v932_v57 = vmax.f32 %v708_v50, 0.0  ;;  %v710_v58 = vadd.f32 %v486_v55, %v262_v52  ;;  %v487_v59 = vld [vmem:[#allocation5 + $0x6f8] sm:$0x1] }
  0xd6   :  { %1155 = vst [vmem:[#allocation7 + $0x6d8] sm:$0xff] %v931_v53  ;;  %v933_v60 = vmax.f32 %v709_v54, 0.0  ;;  %v711_v61 = vadd.f32 %v487_v59, %v263_v56 }
  0xd7   :  { %1156 = vst [vmem:[#allocation7 + $0x6e0] sm:$0x1] %v932_v57  ;;  %v934_v62 = vmax.f32 %v710_v58, 0.0 }
  0xd8   :  { %1157 = vst [vmem:[#allocation7 + $0x6e8] sm:$0x1] %v933_v60  ;;  %v935_v63 = vmax.f32 %v711_v61, 0.0 }
  0xd9   :  { %1158 = vst [vmem:[#allocation7 + $0x6f0] sm:$0x1] %v934_v62 }
  0xda   :  { %1159 = vst [vmem:[#allocation7 + $0x6f8] sm:$0x1] %v935_v63 }
  0xdb   :  { %1238 = shalt.err (!%p1235_p6)
}
  0xdc   :  { %s1239_s10 = scalar_lea.hbm %s1322_s2, 28672 }
  0xdd   :  { %p1240_p7 = scmp.ne.s32.totalorder %s1322_s2, %s1239_s10  ;;  %p1243_p8 = scmp.lt.u32.totalorder %s1239_s10, %s1322_s2 }
  0xdf   :  { %p1245_p9 = pnand %p1243_p8, %p1240_p7 }
  0xe1   :  { %1248 = shalt.err (!%p1245_p9)
}
  0xe2   :  { %1171 = dma.vmem_to_hbm [thread:$0]  %s1166_s6, 28672, %s1322_s2, [#allocation4], %s1256_s19, %s1256_s19, %s1257_s20  }
  0xe3   :  { %1253 = dma.done.wait [#allocation4], 28672  }
  0xe4   :  { %1254 = vsyncadd [#allocation4], 4294938624 }
  0xe5   :  { %1175 = vsyncpa [#allocation3], 1 }
  0xe6   :  { %1176 = vsyncpa [#allocation6], 1 }
  0xe7   :  { %1177 = vsyncpa [#allocation4], 1 }

</bundles_post_ra>
